<compile_context>
chip_gen: v5e
topology: v5e:2x2
jax: 0.10.0
libtpu: 0.0.40
codegen_flags: <defaults>
</compile_context>

<pallas_src>
import jax
import jax.numpy as jnp
from jax.experimental import pallas as pl
from jax.experimental.pallas import tpu as pltpu

OUTPUT_LEN = 100
OUTPUT_DIM = 2
HIDDEN = 50
INPUT_DIM = 1

HP = 64            # hidden dim padded (sublane/lane friendly)
G4 = 4 * HP        # packed gate width per layer (256 lanes)
FC_PAD = 256       # FC output padded to a multiple of 128 lanes (200 -> 256)

_GATE_ORDER = (0, 1, 3, 2)   # PyTorch gate order [i, f, g, o] -> packed [i | f | o | g]


def _make_kernel(T, B):
    def kernel(x_ref, wih0_ref, b0_ref, wrec_ref, b1_ref, wfc_ref, bfc_ref, out_ref):
        x = x_ref[...]            # (B, T)  f32
        wih0 = wih0_ref[...]      # (1, G4) f32 -- single input row (INPUT_DIM == 1)
        b0 = b0_ref[...]          # (1, G4) f32
        b1 = b1_ref[...]          # (1, G4) f32
        wrec = wrec_ref[...]      # (2*HP, 2*G4) bf16 fused recurrent weights

        def gates(g):
            # packed [i|f|o|g]: one wide sigmoid + one tanh per call
            sfo = jax.nn.sigmoid(g[:, :3 * HP])
            return (sfo[:, 0:HP], sfo[:, HP:2 * HP], sfo[:, 2 * HP:3 * HP],
                    jnp.tanh(g[:, 3 * HP:4 * HP]))

        def lstm_cell(g, c):
            i, f, o, gg = gates(g)
            c_new = f * c + i * gg
            h_new = o * jnp.tanh(c_new)
            return h_new, c_new

        def g0_x(s):
            # layer-0 input projection for step s: pure VPU broadcast (no MXU),
            # independent of the recurrent state -> off the serial critical path.
            return x[:, s:s + 1] * wih0 + b0        # (B, G4) f32

        zeros = jnp.zeros((B, HP), jnp.float32)

        # ---- super-step 0: all states are zero -> skip the recurrent matmul ----
        h0, c0 = lstm_cell(g0_x(0), zeros)
        h1, c1 = zeros, zeros

        # ---- super-steps 1 .. T-1: one fused matmul drives layer-0 step s
        #      and layer-1 step s-1 (wavefront) ----
        for s in range(1, T):
            lhs = jnp.concatenate([h0, h1], axis=1).astype(jnp.bfloat16)    # (B, 2*HP)
            mm = jnp.dot(lhs, wrec, preferred_element_type=jnp.float32)     # (B, 2*G4)
            g0 = mm[:, :G4] + g0_x(s)
            g1 = mm[:, G4:] + b1
            h0, c0 = lstm_cell(g0, c0)      # layer-0 step s
            h1, c1 = lstm_cell(g1, c1)      # layer-1 step s-1

        # ---- super-step T: only layer-1 step T-1 remains ----
        lhs = jnp.concatenate([h0, h1], axis=1).astype(jnp.bfloat16)
        mm = jnp.dot(lhs, wrec, preferred_element_type=jnp.float32)
        g1 = mm[:, G4:] + b1
        h1, c1 = lstm_cell(g1, c1)

        # TODO(synk): nn.LSTM inter-layer dropout & self.dropout are identity at eval.

        # Final FC on the last-layer final hidden state; lane-dense (B, 256) store.
        out_ref[...] = jnp.dot(h1.astype(jnp.bfloat16), wfc_ref[...],
                               preferred_element_type=jnp.float32) + bfc_ref[...]
    return kernel


def _pack_cols(w_t):
    """(in_dim, 4H) in PyTorch gate order [i,f,g,o] -> (in_dim, 4*HP) packed [i|f|o|g].

    Padded gate columns are exactly zero (load-bearing invariant)."""
    H = w_t.shape[1] // 4
    chunks = [jnp.pad(w_t[:, k * H:(k + 1) * H], ((0, 0), (0, HP - H)))
              for k in _GATE_ORDER]
    return jnp.concatenate(chunks, axis=1)


def _pad_rows(w, rows):
    return jnp.pad(w, ((0, rows - w.shape[0]), (0, 0)))


def _pack_bias(b_ih, b_hh):
    return _pack_cols((b_ih + b_hh)[None, :]).astype(jnp.float32)     # (1, G4)


def init_params(key):
    """Deterministic init matching PyTorch shapes (uniform +-1/sqrt(H))."""
    H = HIDDEN
    k = 1.0 / jnp.sqrt(jnp.float32(H))
    keys = jax.random.split(key, 10)
    u = lambda kk, shape: jax.random.uniform(kk, shape, jnp.float32, -k, k)
    raw = {
        'wih0': u(keys[0], (4 * H, INPUT_DIM)),
        'whh0': u(keys[1], (4 * H, H)),
        'bih0': u(keys[2], (4 * H,)),
        'bhh0': u(keys[3], (4 * H,)),
        'wih1': u(keys[4], (4 * H, H)),
        'whh1': u(keys[5], (4 * H, H)),
        'bih1': u(keys[6], (4 * H,)),
        'bhh1': u(keys[7], (4 * H,)),
        'wfc': u(keys[8], (OUTPUT_LEN * OUTPUT_DIM, H)),
        'bfc': u(keys[9], (OUTPUT_LEN * OUTPUT_DIM,)),
    }
    nout = OUTPUT_LEN * OUTPUT_DIM

    whh0_p = _pad_rows(_pack_cols(raw['whh0'].T), HP)        # (HP, G4)
    wih1_p = _pad_rows(_pack_cols(raw['wih1'].T), HP)        # (HP, G4)
    whh1_p = _pad_rows(_pack_cols(raw['whh1'].T), HP)        # (HP, G4)
    # Fused recurrent weight: [[Whh0, Wih1], [0, Whh1]]  -> (2*HP, 2*G4) = (128, 512)
    wrec = jnp.concatenate(
        [jnp.concatenate([whh0_p, wih1_p], axis=1),
         jnp.concatenate([jnp.zeros_like(whh1_p), whh1_p], axis=1)],
        axis=0).astype(jnp.bfloat16)

    packed = {
        'wih0': _pack_cols(raw['wih0'].T).astype(jnp.float32),     # (1, G4) f32 (VPU)
        'b0': _pack_bias(raw['bih0'], raw['bhh0']),
        'wrec': wrec,
        'b1': _pack_bias(raw['bih1'], raw['bhh1']),
        'wfc': jnp.pad(raw['wfc'].T,
                       ((0, HP - H), (0, FC_PAD - nout))).astype(jnp.bfloat16),
        'bfc': jnp.pad(raw['bfc'], (0, FC_PAD - nout))[None, :].astype(jnp.float32),
    }
    return raw, packed


@jax.jit
def seq_lstm_forward(x, packed):
    # x: (B, T, input_dim=1), batch_first -- same layout as the PyTorch module.
    B, T, Din = x.shape
    assert Din == INPUT_DIM
    # Only host-side prep: (B,T,1) -> (B,T); XLA lowers this reshape to a bitcast.
    x2 = x.reshape(B, T).astype(jnp.float32)

    vmem = pltpu.MemorySpace.VMEM
    flops = 2 * B * (2 * HP) * (2 * G4) * T + 2 * B * HP * FC_PAD
    transcendentals = 2 * T * B * (5 * HP)
    bytes_accessed = (B * T * 4 + 3 * G4 * 4 + (2 * HP) * (2 * G4) * 2
                      + HP * FC_PAD * 2 + FC_PAD * 4 + B * FC_PAD * 4)

    out = pl.pallas_call(
        _make_kernel(T, B),
        out_shape=jax.ShapeDtypeStruct((B, FC_PAD), jnp.float32),
        in_specs=[pl.BlockSpec(memory_space=vmem)] * 7,
        out_specs=pl.BlockSpec(memory_space=vmem),
        cost_estimate=pl.CostEstimate(flops=flops,
                                      transcendentals=transcendentals,
                                      bytes_accessed=bytes_accessed),
    )(x2, packed['wih0'], packed['b0'], packed['wrec'], packed['b1'],
      packed['wfc'], packed['bfc'])

    return out[:, :OUTPUT_LEN * OUTPUT_DIM].reshape(B, OUTPUT_LEN, OUTPUT_DIM)


def ref_forward(x, raw):
    """Pure-JAX f32 reference matching PyTorch nn.LSTM semantics (eval mode)."""
    B, T, _ = x.shape
    H = HIDDEN
    xt = jnp.transpose(x, (1, 0, 2)).astype(jnp.float32)  # (T, B, Din)

    def run_layer(seq, wih, whh, bih, bhh):
        def step(carry, xin):
            h, c = carry
            g = xin @ wih.T + h @ whh.T + bih + bhh
            i = jax.nn.sigmoid(g[:, 0:H])
            f = jax.nn.sigmoid(g[:, H:2 * H])
            gg = jnp.tanh(g[:, 2 * H:3 * H])
            o = jax.nn.sigmoid(g[:, 3 * H:4 * H])
            c = f * c + i * gg
            h = o * jnp.tanh(c)
            return (h, c), h
        init = (jnp.zeros((B, H), jnp.float32), jnp.zeros((B, H), jnp.float32))
        (h, c), hs = jax.lax.scan(step, init, seq)
        return hs, h

    hs0, _ = run_layer(xt, raw['wih0'], raw['whh0'], raw['bih0'], raw['bhh0'])
    _, h1 = run_layer(hs0, raw['wih1'], raw['whh1'], raw['bih1'], raw['bhh1'])
    out = h1 @ raw['wfc'].T + raw['bfc']
    return out.reshape(B, OUTPUT_LEN, OUTPUT_DIM)


if __name__ == "__main__":
    key = jax.random.PRNGKey(0)
    pkey, xkey = jax.random.split(key)
    raw, packed = init_params(pkey)

    # Assert the zero-padding invariant of every packed gate block / bias.
    for name in ('wih0', 'b0', 'b1'):
        w = packed[name]
        for g in range(4):
            assert not bool(jnp.any(w[:, g * HP + HIDDEN:(g + 1) * HP] != 0)), \
                f"padding invariant violated in {name}"
    w = packed['wrec']
    for g in range(8):
        assert not bool(jnp.any(w[:, g * HP + HIDDEN:(g + 1) * HP] != 0)), \
            "padding invariant violated in wrec"
    assert not bool(jnp.any(w[HP:, :G4] != 0)), \
        "layer-1 hidden must not feed layer-0 gates"

    B, T = 8, 8
    x = jax.random.normal(xkey, (B, T, INPUT_DIM), jnp.float32)

    out = jax.block_until_ready(seq_lstm_forward(x, packed))
    ref = ref_forward(x, raw)

    assert out.shape == (B, OUTPUT_LEN, OUTPUT_DIM)
    # bf16 MXU operands (f32 accumulation) -> tolerance relaxed vs the pure-f32 reference.
    assert jnp.allclose(out, ref, atol=2e-2, rtol=2e-2), "mismatch vs reference"

    print("KERNEL_OK")
</pallas_src>

<mosaic_0001>
module attributes {stable_mosaic.version = 11 : i64} {
  func.func @kernel(%arg0: memref<8x8xf32, #tpu.memory_space<vmem>>, %arg1: memref<1x256xf32, #tpu.memory_space<vmem>>, %arg2: memref<1x256xf32, #tpu.memory_space<vmem>>, %arg3: memref<128x512xbf16, #tpu.memory_space<vmem>>, %arg4: memref<1x256xf32, #tpu.memory_space<vmem>>, %arg5: memref<64x256xbf16, #tpu.memory_space<vmem>>, %arg6: memref<1x256xf32, #tpu.memory_space<vmem>>, %arg7: memref<8x256xf32, #tpu.memory_space<vmem>>) attributes {dimension_semantics = [], scalar_prefetch = 0 : i64, scratch_operands = 0 : i64, tpu.core_type = #tpu.core_type<tc>} {
    %c0 = arith.constant 0 : index
    %c0_0 = arith.constant 0 : index
    %0 = vector.load %arg0[%c0, %c0_0] : memref<8x8xf32, #tpu.memory_space<vmem>>, vector<8x8xf32>
    %c0_1 = arith.constant 0 : index
    %c0_2 = arith.constant 0 : index
    %1 = vector.load %arg1[%c0_1, %c0_2] : memref<1x256xf32, #tpu.memory_space<vmem>>, vector<1x256xf32>
    %c0_3 = arith.constant 0 : index
    %c0_4 = arith.constant 0 : index
    %2 = vector.load %arg2[%c0_3, %c0_4] : memref<1x256xf32, #tpu.memory_space<vmem>>, vector<1x256xf32>
    %c0_5 = arith.constant 0 : index
    %c0_6 = arith.constant 0 : index
    %3 = vector.load %arg4[%c0_5, %c0_6] : memref<1x256xf32, #tpu.memory_space<vmem>>, vector<1x256xf32>
    %c0_7 = arith.constant 0 : index
    %c0_8 = arith.constant 0 : index
    %4 = vector.load %arg3[%c0_7, %c0_8] : memref<128x512xbf16, #tpu.memory_space<vmem>>, vector<128x512xbf16>
    %cst = arith.constant 0.000000e+00 : f32
    %5 = vector.broadcast %cst : f32 to vector<8x64xf32>
    %6 = vector.extract_strided_slice %0 {offsets = [0, 0], sizes = [8, 1], strides = [1, 1]} : vector<8x8xf32> to vector<8x1xf32>
    %7 = vector.broadcast %6 : vector<8x1xf32> to vector<8x256xf32>
    %8 = vector.broadcast %1 : vector<1x256xf32> to vector<8x256xf32>
    %9 = arith.mulf %7, %8 : vector<8x256xf32>
    %10 = vector.broadcast %2 : vector<1x256xf32> to vector<8x256xf32>
    %11 = arith.addf %9, %10 : vector<8x256xf32>
    %12 = vector.extract_strided_slice %11 {offsets = [0, 0], sizes = [8, 192], strides = [1, 1]} : vector<8x256xf32> to vector<8x192xf32>
    %13 = arith.negf %12 : vector<8x192xf32>
    %14 = math.exp %13 : vector<8x192xf32>
    %cst_9 = arith.constant 1.000000e+00 : f32
    %15 = vector.broadcast %cst_9 : f32 to vector<8x192xf32>
    %16 = arith.addf %15, %14 : vector<8x192xf32>
    %17 = arith.divf %15, %16 : vector<8x192xf32>
    %18 = vector.extract_strided_slice %17 {offsets = [0, 0], sizes = [8, 64], strides = [1, 1]} : vector<8x192xf32> to vector<8x64xf32>
    %19 = vector.extract_strided_slice %17 {offsets = [0, 64], sizes = [8, 64], strides = [1, 1]} : vector<8x192xf32> to vector<8x64xf32>
    %20 = vector.extract_strided_slice %17 {offsets = [0, 128], sizes = [8, 64], strides = [1, 1]} : vector<8x192xf32> to vector<8x64xf32>
    %21 = vector.extract_strided_slice %11 {offsets = [0, 192], sizes = [8, 64], strides = [1, 1]} : vector<8x256xf32> to vector<8x64xf32>
    %22 = math.tanh %21 : vector<8x64xf32>
    %23 = arith.mulf %19, %5 : vector<8x64xf32>
    %24 = arith.mulf %18, %22 : vector<8x64xf32>
    %25 = arith.addf %23, %24 : vector<8x64xf32>
    %26 = math.tanh %25 : vector<8x64xf32>
    %27 = arith.mulf %20, %26 : vector<8x64xf32>
    %28 = tpu.concatenate %27, %5 in 1 : vector<8x64xf32>, vector<8x64xf32> -> vector<8x128xf32>
    %29 = arith.truncf %28 : vector<8x128xf32> to vector<8x128xbf16>
    %cst_10 = arith.constant dense<0.000000e+00> : vector<8x512xf32>
    %30 = tpu.matmul %29, %4, %cst_10 {dimension_numbers = #tpu.dot_dimension_numbers<[1], [0], [0], [1], [0, 0, 1, 1], [], []>} : vector<8x128xbf16>, vector<128x512xbf16>, vector<8x512xf32> -> vector<8x512xf32>
    %31 = vector.extract_strided_slice %30 {offsets = [0, 0], sizes = [8, 256], strides = [1, 1]} : vector<8x512xf32> to vector<8x256xf32>
    %32 = vector.extract_strided_slice %0 {offsets = [0, 1], sizes = [8, 1], strides = [1, 1]} : vector<8x8xf32> to vector<8x1xf32>
    %33 = vector.broadcast %32 : vector<8x1xf32> to vector<8x256xf32>
    %34 = vector.broadcast %1 : vector<1x256xf32> to vector<8x256xf32>
    %35 = arith.mulf %33, %34 : vector<8x256xf32>
    %36 = vector.broadcast %2 : vector<1x256xf32> to vector<8x256xf32>
    %37 = arith.addf %35, %36 : vector<8x256xf32>
    %38 = arith.addf %31, %37 : vector<8x256xf32>
    %39 = vector.extract_strided_slice %30 {offsets = [0, 256], sizes = [8, 256], strides = [1, 1]} : vector<8x512xf32> to vector<8x256xf32>
    %40 = vector.broadcast %3 : vector<1x256xf32> to vector<8x256xf32>
    %41 = arith.addf %39, %40 : vector<8x256xf32>
    %42 = vector.extract_strided_slice %38 {offsets = [0, 0], sizes = [8, 192], strides = [1, 1]} : vector<8x256xf32> to vector<8x192xf32>
    %43 = arith.negf %42 : vector<8x192xf32>
    %44 = math.exp %43 : vector<8x192xf32>
    %cst_11 = arith.constant 1.000000e+00 : f32
    %45 = vector.broadcast %cst_11 : f32 to vector<8x192xf32>
    %46 = arith.addf %45, %44 : vector<8x192xf32>
    %47 = arith.divf %45, %46 : vector<8x192xf32>
    %48 = vector.extract_strided_slice %47 {offsets = [0, 0], sizes = [8, 64], strides = [1, 1]} : vector<8x192xf32> to vector<8x64xf32>
    %49 = vector.extract_strided_slice %47 {offsets = [0, 64], sizes = [8, 64], strides = [1, 1]} : vector<8x192xf32> to vector<8x64xf32>
    %50 = vector.extract_strided_slice %47 {offsets = [0, 128], sizes = [8, 64], strides = [1, 1]} : vector<8x192xf32> to vector<8x64xf32>
    %51 = vector.extract_strided_slice %38 {offsets = [0, 192], sizes = [8, 64], strides = [1, 1]} : vector<8x256xf32> to vector<8x64xf32>
    %52 = math.tanh %51 : vector<8x64xf32>
    %53 = arith.mulf %49, %25 : vector<8x64xf32>
    %54 = arith.mulf %48, %52 : vector<8x64xf32>
    %55 = arith.addf %53, %54 : vector<8x64xf32>
    %56 = math.tanh %55 : vector<8x64xf32>
    %57 = arith.mulf %50, %56 : vector<8x64xf32>
    %58 = vector.extract_strided_slice %41 {offsets = [0, 0], sizes = [8, 192], strides = [1, 1]} : vector<8x256xf32> to vector<8x192xf32>
    %59 = arith.negf %58 : vector<8x192xf32>
    %60 = math.exp %59 : vector<8x192xf32>
    %cst_12 = arith.constant 1.000000e+00 : f32
    %61 = vector.broadcast %cst_12 : f32 to vector<8x192xf32>
    %62 = arith.addf %61, %60 : vector<8x192xf32>
    %63 = arith.divf %61, %62 : vector<8x192xf32>
    %64 = vector.extract_strided_slice %63 {offsets = [0, 0], sizes = [8, 64], strides = [1, 1]} : vector<8x192xf32> to vector<8x64xf32>
    %65 = vector.extract_strided_slice %63 {offsets = [0, 64], sizes = [8, 64], strides = [1, 1]} : vector<8x192xf32> to vector<8x64xf32>
    %66 = vector.extract_strided_slice %63 {offsets = [0, 128], sizes = [8, 64], strides = [1, 1]} : vector<8x192xf32> to vector<8x64xf32>
    %67 = vector.extract_strided_slice %41 {offsets = [0, 192], sizes = [8, 64], strides = [1, 1]} : vector<8x256xf32> to vector<8x64xf32>
    %68 = math.tanh %67 : vector<8x64xf32>
    %69 = arith.mulf %65, %5 : vector<8x64xf32>
    %70 = arith.mulf %64, %68 : vector<8x64xf32>
    %71 = arith.addf %69, %70 : vector<8x64xf32>
    %72 = math.tanh %71 : vector<8x64xf32>
    %73 = arith.mulf %66, %72 : vector<8x64xf32>
    %74 = tpu.concatenate %57, %73 in 1 : vector<8x64xf32>, vector<8x64xf32> -> vector<8x128xf32>
    %75 = arith.truncf %74 : vector<8x128xf32> to vector<8x128xbf16>
    %cst_13 = arith.constant dense<0.000000e+00> : vector<8x512xf32>
    %76 = tpu.matmul %75, %4, %cst_13 {dimension_numbers = #tpu.dot_dimension_numbers<[1], [0], [0], [1], [0, 0, 1, 1], [], []>} : vector<8x128xbf16>, vector<128x512xbf16>, vector<8x512xf32> -> vector<8x512xf32>
    %77 = vector.extract_strided_slice %76 {offsets = [0, 0], sizes = [8, 256], strides = [1, 1]} : vector<8x512xf32> to vector<8x256xf32>
    %78 = vector.extract_strided_slice %0 {offsets = [0, 2], sizes = [8, 1], strides = [1, 1]} : vector<8x8xf32> to vector<8x1xf32>
    %79 = vector.broadcast %78 : vector<8x1xf32> to vector<8x256xf32>
    %80 = vector.broadcast %1 : vector<1x256xf32> to vector<8x256xf32>
    %81 = arith.mulf %79, %80 : vector<8x256xf32>
    %82 = vector.broadcast %2 : vector<1x256xf32> to vector<8x256xf32>
    %83 = arith.addf %81, %82 : vector<8x256xf32>
    %84 = arith.addf %77, %83 : vector<8x256xf32>
    %85 = vector.extract_strided_slice %76 {offsets = [0, 256], sizes = [8, 256], strides = [1, 1]} : vector<8x512xf32> to vector<8x256xf32>
    %86 = vector.broadcast %3 : vector<1x256xf32> to vector<8x256xf32>
    %87 = arith.addf %85, %86 : vector<8x256xf32>
    %88 = vector.extract_strided_slice %84 {offsets = [0, 0], sizes = [8, 192], strides = [1, 1]} : vector<8x256xf32> to vector<8x192xf32>
    %89 = arith.negf %88 : vector<8x192xf32>
    %90 = math.exp %89 : vector<8x192xf32>
    %cst_14 = arith.constant 1.000000e+00 : f32
    %91 = vector.broadcast %cst_14 : f32 to vector<8x192xf32>
    %92 = arith.addf %91, %90 : vector<8x192xf32>
    %93 = arith.divf %91, %92 : vector<8x192xf32>
    %94 = vector.extract_strided_slice %93 {offsets = [0, 0], sizes = [8, 64], strides = [1, 1]} : vector<8x192xf32> to vector<8x64xf32>
    %95 = vector.extract_strided_slice %93 {offsets = [0, 64], sizes = [8, 64], strides = [1, 1]} : vector<8x192xf32> to vector<8x64xf32>
    %96 = vector.extract_strided_slice %93 {offsets = [0, 128], sizes = [8, 64], strides = [1, 1]} : vector<8x192xf32> to vector<8x64xf32>
    %97 = vector.extract_strided_slice %84 {offsets = [0, 192], sizes = [8, 64], strides = [1, 1]} : vector<8x256xf32> to vector<8x64xf32>
    %98 = math.tanh %97 : vector<8x64xf32>
    %99 = arith.mulf %95, %55 : vector<8x64xf32>
    %100 = arith.mulf %94, %98 : vector<8x64xf32>
    %101 = arith.addf %99, %100 : vector<8x64xf32>
    %102 = math.tanh %101 : vector<8x64xf32>
    %103 = arith.mulf %96, %102 : vector<8x64xf32>
    %104 = vector.extract_strided_slice %87 {offsets = [0, 0], sizes = [8, 192], strides = [1, 1]} : vector<8x256xf32> to vector<8x192xf32>
    %105 = arith.negf %104 : vector<8x192xf32>
    %106 = math.exp %105 : vector<8x192xf32>
    %cst_15 = arith.constant 1.000000e+00 : f32
    %107 = vector.broadcast %cst_15 : f32 to vector<8x192xf32>
    %108 = arith.addf %107, %106 : vector<8x192xf32>
    %109 = arith.divf %107, %108 : vector<8x192xf32>
    %110 = vector.extract_strided_slice %109 {offsets = [0, 0], sizes = [8, 64], strides = [1, 1]} : vector<8x192xf32> to vector<8x64xf32>
    %111 = vector.extract_strided_slice %109 {offsets = [0, 64], sizes = [8, 64], strides = [1, 1]} : vector<8x192xf32> to vector<8x64xf32>
    %112 = vector.extract_strided_slice %109 {offsets = [0, 128], sizes = [8, 64], strides = [1, 1]} : vector<8x192xf32> to vector<8x64xf32>
    %113 = vector.extract_strided_slice %87 {offsets = [0, 192], sizes = [8, 64], strides = [1, 1]} : vector<8x256xf32> to vector<8x64xf32>
    %114 = math.tanh %113 : vector<8x64xf32>
    %115 = arith.mulf %111, %71 : vector<8x64xf32>
    %116 = arith.mulf %110, %114 : vector<8x64xf32>
    %117 = arith.addf %115, %116 : vector<8x64xf32>
    %118 = math.tanh %117 : vector<8x64xf32>
    %119 = arith.mulf %112, %118 : vector<8x64xf32>
    %120 = tpu.concatenate %103, %119 in 1 : vector<8x64xf32>, vector<8x64xf32> -> vector<8x128xf32>
    %121 = arith.truncf %120 : vector<8x128xf32> to vector<8x128xbf16>
    %cst_16 = arith.constant dense<0.000000e+00> : vector<8x512xf32>
    %122 = tpu.matmul %121, %4, %cst_16 {dimension_numbers = #tpu.dot_dimension_numbers<[1], [0], [0], [1], [0, 0, 1, 1], [], []>} : vector<8x128xbf16>, vector<128x512xbf16>, vector<8x512xf32> -> vector<8x512xf32>
    %123 = vector.extract_strided_slice %122 {offsets = [0, 0], sizes = [8, 256], strides = [1, 1]} : vector<8x512xf32> to vector<8x256xf32>
    %124 = vector.extract_strided_slice %0 {offsets = [0, 3], sizes = [8, 1], strides = [1, 1]} : vector<8x8xf32> to vector<8x1xf32>
    %125 = vector.broadcast %124 : vector<8x1xf32> to vector<8x256xf32>
    %126 = vector.broadcast %1 : vector<1x256xf32> to vector<8x256xf32>
    %127 = arith.mulf %125, %126 : vector<8x256xf32>
    %128 = vector.broadcast %2 : vector<1x256xf32> to vector<8x256xf32>
    %129 = arith.addf %127, %128 : vector<8x256xf32>
    %130 = arith.addf %123, %129 : vector<8x256xf32>
    %131 = vector.extract_strided_slice %122 {offsets = [0, 256], sizes = [8, 256], strides = [1, 1]} : vector<8x512xf32> to vector<8x256xf32>
    %132 = vector.broadcast %3 : vector<1x256xf32> to vector<8x256xf32>
    %133 = arith.addf %131, %132 : vector<8x256xf32>
    %134 = vector.extract_strided_slice %130 {offsets = [0, 0], sizes = [8, 192], strides = [1, 1]} : vector<8x256xf32> to vector<8x192xf32>
    %135 = arith.negf %134 : vector<8x192xf32>
    %136 = math.exp %135 : vector<8x192xf32>
    %cst_17 = arith.constant 1.000000e+00 : f32
    %137 = vector.broadcast %cst_17 : f32 to vector<8x192xf32>
    %138 = arith.addf %137, %136 : vector<8x192xf32>
    %139 = arith.divf %137, %138 : vector<8x192xf32>
    %140 = vector.extract_strided_slice %139 {offsets = [0, 0], sizes = [8, 64], strides = [1, 1]} : vector<8x192xf32> to vector<8x64xf32>
    %141 = vector.extract_strided_slice %139 {offsets = [0, 64], sizes = [8, 64], strides = [1, 1]} : vector<8x192xf32> to vector<8x64xf32>
    %142 = vector.extract_strided_slice %139 {offsets = [0, 128], sizes = [8, 64], strides = [1, 1]} : vector<8x192xf32> to vector<8x64xf32>
    %143 = vector.extract_strided_slice %130 {offsets = [0, 192], sizes = [8, 64], strides = [1, 1]} : vector<8x256xf32> to vector<8x64xf32>
    %144 = math.tanh %143 : vector<8x64xf32>
    %145 = arith.mulf %141, %101 : vector<8x64xf32>
    %146 = arith.mulf %140, %144 : vector<8x64xf32>
    %147 = arith.addf %145, %146 : vector<8x64xf32>
    %148 = math.tanh %147 : vector<8x64xf32>
    %149 = arith.mulf %142, %148 : vector<8x64xf32>
    %150 = vector.extract_strided_slice %133 {offsets = [0, 0], sizes = [8, 192], strides = [1, 1]} : vector<8x256xf32> to vector<8x192xf32>
    %151 = arith.negf %150 : vector<8x192xf32>
    %152 = math.exp %151 : vector<8x192xf32>
    %cst_18 = arith.constant 1.000000e+00 : f32
    %153 = vector.broadcast %cst_18 : f32 to vector<8x192xf32>
    %154 = arith.addf %153, %152 : vector<8x192xf32>
    %155 = arith.divf %153, %154 : vector<8x192xf32>
    %156 = vector.extract_strided_slice %155 {offsets = [0, 0], sizes = [8, 64], strides = [1, 1]} : vector<8x192xf32> to vector<8x64xf32>
    %157 = vector.extract_strided_slice %155 {offsets = [0, 64], sizes = [8, 64], strides = [1, 1]} : vector<8x192xf32> to vector<8x64xf32>
    %158 = vector.extract_strided_slice %155 {offsets = [0, 128], sizes = [8, 64], strides = [1, 1]} : vector<8x192xf32> to vector<8x64xf32>
    %159 = vector.extract_strided_slice %133 {offsets = [0, 192], sizes = [8, 64], strides = [1, 1]} : vector<8x256xf32> to vector<8x64xf32>
    %160 = math.tanh %159 : vector<8x64xf32>
    %161 = arith.mulf %157, %117 : vector<8x64xf32>
    %162 = arith.mulf %156, %160 : vector<8x64xf32>
    %163 = arith.addf %161, %162 : vector<8x64xf32>
    %164 = math.tanh %163 : vector<8x64xf32>
    %165 = arith.mulf %158, %164 : vector<8x64xf32>
    %166 = tpu.concatenate %149, %165 in 1 : vector<8x64xf32>, vector<8x64xf32> -> vector<8x128xf32>
    %167 = arith.truncf %166 : vector<8x128xf32> to vector<8x128xbf16>
    %cst_19 = arith.constant dense<0.000000e+00> : vector<8x512xf32>
    %168 = tpu.matmul %167, %4, %cst_19 {dimension_numbers = #tpu.dot_dimension_numbers<[1], [0], [0], [1], [0, 0, 1, 1], [], []>} : vector<8x128xbf16>, vector<128x512xbf16>, vector<8x512xf32> -> vector<8x512xf32>
    %169 = vector.extract_strided_slice %168 {offsets = [0, 0], sizes = [8, 256], strides = [1, 1]} : vector<8x512xf32> to vector<8x256xf32>
    %170 = vector.extract_strided_slice %0 {offsets = [0, 4], sizes = [8, 1], strides = [1, 1]} : vector<8x8xf32> to vector<8x1xf32>
    %171 = vector.broadcast %170 : vector<8x1xf32> to vector<8x256xf32>
    %172 = vector.broadcast %1 : vector<1x256xf32> to vector<8x256xf32>
    %173 = arith.mulf %171, %172 : vector<8x256xf32>
    %174 = vector.broadcast %2 : vector<1x256xf32> to vector<8x256xf32>
    %175 = arith.addf %173, %174 : vector<8x256xf32>
    %176 = arith.addf %169, %175 : vector<8x256xf32>
    %177 = vector.extract_strided_slice %168 {offsets = [0, 256], sizes = [8, 256], strides = [1, 1]} : vector<8x512xf32> to vector<8x256xf32>
    %178 = vector.broadcast %3 : vector<1x256xf32> to vector<8x256xf32>
    %179 = arith.addf %177, %178 : vector<8x256xf32>
    %180 = vector.extract_strided_slice %176 {offsets = [0, 0], sizes = [8, 192], strides = [1, 1]} : vector<8x256xf32> to vector<8x192xf32>
    %181 = arith.negf %180 : vector<8x192xf32>
    %182 = math.exp %181 : vector<8x192xf32>
    %cst_20 = arith.constant 1.000000e+00 : f32
    %183 = vector.broadcast %cst_20 : f32 to vector<8x192xf32>
    %184 = arith.addf %183, %182 : vector<8x192xf32>
    %185 = arith.divf %183, %184 : vector<8x192xf32>
    %186 = vector.extract_strided_slice %185 {offsets = [0, 0], sizes = [8, 64], strides = [1, 1]} : vector<8x192xf32> to vector<8x64xf32>
    %187 = vector.extract_strided_slice %185 {offsets = [0, 64], sizes = [8, 64], strides = [1, 1]} : vector<8x192xf32> to vector<8x64xf32>
    %188 = vector.extract_strided_slice %185 {offsets = [0, 128], sizes = [8, 64], strides = [1, 1]} : vector<8x192xf32> to vector<8x64xf32>
    %189 = vector.extract_strided_slice %176 {offsets = [0, 192], sizes = [8, 64], strides = [1, 1]} : vector<8x256xf32> to vector<8x64xf32>
    %190 = math.tanh %189 : vector<8x64xf32>
    %191 = arith.mulf %187, %147 : vector<8x64xf32>
    %192 = arith.mulf %186, %190 : vector<8x64xf32>
    %193 = arith.addf %191, %192 : vector<8x64xf32>
    %194 = math.tanh %193 : vector<8x64xf32>
    %195 = arith.mulf %188, %194 : vector<8x64xf32>
    %196 = vector.extract_strided_slice %179 {offsets = [0, 0], sizes = [8, 192], strides = [1, 1]} : vector<8x256xf32> to vector<8x192xf32>
    %197 = arith.negf %196 : vector<8x192xf32>
    %198 = math.exp %197 : vector<8x192xf32>
    %cst_21 = arith.constant 1.000000e+00 : f32
    %199 = vector.broadcast %cst_21 : f32 to vector<8x192xf32>
    %200 = arith.addf %199, %198 : vector<8x192xf32>
    %201 = arith.divf %199, %200 : vector<8x192xf32>
    %202 = vector.extract_strided_slice %201 {offsets = [0, 0], sizes = [8, 64], strides = [1, 1]} : vector<8x192xf32> to vector<8x64xf32>
    %203 = vector.extract_strided_slice %201 {offsets = [0, 64], sizes = [8, 64], strides = [1, 1]} : vector<8x192xf32> to vector<8x64xf32>
    %204 = vector.extract_strided_slice %201 {offsets = [0, 128], sizes = [8, 64], strides = [1, 1]} : vector<8x192xf32> to vector<8x64xf32>
    %205 = vector.extract_strided_slice %179 {offsets = [0, 192], sizes = [8, 64], strides = [1, 1]} : vector<8x256xf32> to vector<8x64xf32>
    %206 = math.tanh %205 : vector<8x64xf32>
    %207 = arith.mulf %203, %163 : vector<8x64xf32>
    %208 = arith.mulf %202, %206 : vector<8x64xf32>
    %209 = arith.addf %207, %208 : vector<8x64xf32>
    %210 = math.tanh %209 : vector<8x64xf32>
    %211 = arith.mulf %204, %210 : vector<8x64xf32>
    %212 = tpu.concatenate %195, %211 in 1 : vector<8x64xf32>, vector<8x64xf32> -> vector<8x128xf32>
    %213 = arith.truncf %212 : vector<8x128xf32> to vector<8x128xbf16>
    %cst_22 = arith.constant dense<0.000000e+00> : vector<8x512xf32>
    %214 = tpu.matmul %213, %4, %cst_22 {dimension_numbers = #tpu.dot_dimension_numbers<[1], [0], [0], [1], [0, 0, 1, 1], [], []>} : vector<8x128xbf16>, vector<128x512xbf16>, vector<8x512xf32> -> vector<8x512xf32>
    %215 = vector.extract_strided_slice %214 {offsets = [0, 0], sizes = [8, 256], strides = [1, 1]} : vector<8x512xf32> to vector<8x256xf32>
    %216 = vector.extract_strided_slice %0 {offsets = [0, 5], sizes = [8, 1], strides = [1, 1]} : vector<8x8xf32> to vector<8x1xf32>
    %217 = vector.broadcast %216 : vector<8x1xf32> to vector<8x256xf32>
    %218 = vector.broadcast %1 : vector<1x256xf32> to vector<8x256xf32>
    %219 = arith.mulf %217, %218 : vector<8x256xf32>
    %220 = vector.broadcast %2 : vector<1x256xf32> to vector<8x256xf32>
    %221 = arith.addf %219, %220 : vector<8x256xf32>
    %222 = arith.addf %215, %221 : vector<8x256xf32>
    %223 = vector.extract_strided_slice %214 {offsets = [0, 256], sizes = [8, 256], strides = [1, 1]} : vector<8x512xf32> to vector<8x256xf32>
    %224 = vector.broadcast %3 : vector<1x256xf32> to vector<8x256xf32>
    %225 = arith.addf %223, %224 : vector<8x256xf32>
    %226 = vector.extract_strided_slice %222 {offsets = [0, 0], sizes = [8, 192], strides = [1, 1]} : vector<8x256xf32> to vector<8x192xf32>
    %227 = arith.negf %226 : vector<8x192xf32>
    %228 = math.exp %227 : vector<8x192xf32>
    %cst_23 = arith.constant 1.000000e+00 : f32
    %229 = vector.broadcast %cst_23 : f32 to vector<8x192xf32>
    %230 = arith.addf %229, %228 : vector<8x192xf32>
    %231 = arith.divf %229, %230 : vector<8x192xf32>
    %232 = vector.extract_strided_slice %231 {offsets = [0, 0], sizes = [8, 64], strides = [1, 1]} : vector<8x192xf32> to vector<8x64xf32>
    %233 = vector.extract_strided_slice %231 {offsets = [0, 64], sizes = [8, 64], strides = [1, 1]} : vector<8x192xf32> to vector<8x64xf32>
    %234 = vector.extract_strided_slice %231 {offsets = [0, 128], sizes = [8, 64], strides = [1, 1]} : vector<8x192xf32> to vector<8x64xf32>
    %235 = vector.extract_strided_slice %222 {offsets = [0, 192], sizes = [8, 64], strides = [1, 1]} : vector<8x256xf32> to vector<8x64xf32>
    %236 = math.tanh %235 : vector<8x64xf32>
    %237 = arith.mulf %233, %193 : vector<8x64xf32>
    %238 = arith.mulf %232, %236 : vector<8x64xf32>
    %239 = arith.addf %237, %238 : vector<8x64xf32>
    %240 = math.tanh %239 : vector<8x64xf32>
    %241 = arith.mulf %234, %240 : vector<8x64xf32>
    %242 = vector.extract_strided_slice %225 {offsets = [0, 0], sizes = [8, 192], strides = [1, 1]} : vector<8x256xf32> to vector<8x192xf32>
    %243 = arith.negf %242 : vector<8x192xf32>
    %244 = math.exp %243 : vector<8x192xf32>
    %cst_24 = arith.constant 1.000000e+00 : f32
    %245 = vector.broadcast %cst_24 : f32 to vector<8x192xf32>
    %246 = arith.addf %245, %244 : vector<8x192xf32>
    %247 = arith.divf %245, %246 : vector<8x192xf32>
    %248 = vector.extract_strided_slice %247 {offsets = [0, 0], sizes = [8, 64], strides = [1, 1]} : vector<8x192xf32> to vector<8x64xf32>
    %249 = vector.extract_strided_slice %247 {offsets = [0, 64], sizes = [8, 64], strides = [1, 1]} : vector<8x192xf32> to vector<8x64xf32>
    %250 = vector.extract_strided_slice %247 {offsets = [0, 128], sizes = [8, 64], strides = [1, 1]} : vector<8x192xf32> to vector<8x64xf32>
    %251 = vector.extract_strided_slice %225 {offsets = [0, 192], sizes = [8, 64], strides = [1, 1]} : vector<8x256xf32> to vector<8x64xf32>
    %252 = math.tanh %251 : vector<8x64xf32>
    %253 = arith.mulf %249, %209 : vector<8x64xf32>
    %254 = arith.mulf %248, %252 : vector<8x64xf32>
    %255 = arith.addf %253, %254 : vector<8x64xf32>
    %256 = math.tanh %255 : vector<8x64xf32>
    %257 = arith.mulf %250, %256 : vector<8x64xf32>
    %258 = tpu.concatenate %241, %257 in 1 : vector<8x64xf32>, vector<8x64xf32> -> vector<8x128xf32>
    %259 = arith.truncf %258 : vector<8x128xf32> to vector<8x128xbf16>
    %cst_25 = arith.constant dense<0.000000e+00> : vector<8x512xf32>
    %260 = tpu.matmul %259, %4, %cst_25 {dimension_numbers = #tpu.dot_dimension_numbers<[1], [0], [0], [1], [0, 0, 1, 1], [], []>} : vector<8x128xbf16>, vector<128x512xbf16>, vector<8x512xf32> -> vector<8x512xf32>
    %261 = vector.extract_strided_slice %260 {offsets = [0, 0], sizes = [8, 256], strides = [1, 1]} : vector<8x512xf32> to vector<8x256xf32>
    %262 = vector.extract_strided_slice %0 {offsets = [0, 6], sizes = [8, 1], strides = [1, 1]} : vector<8x8xf32> to vector<8x1xf32>
    %263 = vector.broadcast %262 : vector<8x1xf32> to vector<8x256xf32>
    %264 = vector.broadcast %1 : vector<1x256xf32> to vector<8x256xf32>
    %265 = arith.mulf %263, %264 : vector<8x256xf32>
    %266 = vector.broadcast %2 : vector<1x256xf32> to vector<8x256xf32>
    %267 = arith.addf %265, %266 : vector<8x256xf32>
    %268 = arith.addf %261, %267 : vector<8x256xf32>
    %269 = vector.extract_strided_slice %260 {offsets = [0, 256], sizes = [8, 256], strides = [1, 1]} : vector<8x512xf32> to vector<8x256xf32>
    %270 = vector.broadcast %3 : vector<1x256xf32> to vector<8x256xf32>
    %271 = arith.addf %269, %270 : vector<8x256xf32>
    %272 = vector.extract_strided_slice %268 {offsets = [0, 0], sizes = [8, 192], strides = [1, 1]} : vector<8x256xf32> to vector<8x192xf32>
    %273 = arith.negf %272 : vector<8x192xf32>
    %274 = math.exp %273 : vector<8x192xf32>
    %cst_26 = arith.constant 1.000000e+00 : f32
    %275 = vector.broadcast %cst_26 : f32 to vector<8x192xf32>
    %276 = arith.addf %275, %274 : vector<8x192xf32>
    %277 = arith.divf %275, %276 : vector<8x192xf32>
    %278 = vector.extract_strided_slice %277 {offsets = [0, 0], sizes = [8, 64], strides = [1, 1]} : vector<8x192xf32> to vector<8x64xf32>
    %279 = vector.extract_strided_slice %277 {offsets = [0, 64], sizes = [8, 64], strides = [1, 1]} : vector<8x192xf32> to vector<8x64xf32>
    %280 = vector.extract_strided_slice %277 {offsets = [0, 128], sizes = [8, 64], strides = [1, 1]} : vector<8x192xf32> to vector<8x64xf32>
    %281 = vector.extract_strided_slice %268 {offsets = [0, 192], sizes = [8, 64], strides = [1, 1]} : vector<8x256xf32> to vector<8x64xf32>
    %282 = math.tanh %281 : vector<8x64xf32>
    %283 = arith.mulf %279, %239 : vector<8x64xf32>
    %284 = arith.mulf %278, %282 : vector<8x64xf32>
    %285 = arith.addf %283, %284 : vector<8x64xf32>
    %286 = math.tanh %285 : vector<8x64xf32>
    %287 = arith.mulf %280, %286 : vector<8x64xf32>
    %288 = vector.extract_strided_slice %271 {offsets = [0, 0], sizes = [8, 192], strides = [1, 1]} : vector<8x256xf32> to vector<8x192xf32>
    %289 = arith.negf %288 : vector<8x192xf32>
    %290 = math.exp %289 : vector<8x192xf32>
    %cst_27 = arith.constant 1.000000e+00 : f32
    %291 = vector.broadcast %cst_27 : f32 to vector<8x192xf32>
    %292 = arith.addf %291, %290 : vector<8x192xf32>
    %293 = arith.divf %291, %292 : vector<8x192xf32>
    %294 = vector.extract_strided_slice %293 {offsets = [0, 0], sizes = [8, 64], strides = [1, 1]} : vector<8x192xf32> to vector<8x64xf32>
    %295 = vector.extract_strided_slice %293 {offsets = [0, 64], sizes = [8, 64], strides = [1, 1]} : vector<8x192xf32> to vector<8x64xf32>
    %296 = vector.extract_strided_slice %293 {offsets = [0, 128], sizes = [8, 64], strides = [1, 1]} : vector<8x192xf32> to vector<8x64xf32>
    %297 = vector.extract_strided_slice %271 {offsets = [0, 192], sizes = [8, 64], strides = [1, 1]} : vector<8x256xf32> to vector<8x64xf32>
    %298 = math.tanh %297 : vector<8x64xf32>
    %299 = arith.mulf %295, %255 : vector<8x64xf32>
    %300 = arith.mulf %294, %298 : vector<8x64xf32>
    %301 = arith.addf %299, %300 : vector<8x64xf32>
    %302 = math.tanh %301 : vector<8x64xf32>
    %303 = arith.mulf %296, %302 : vector<8x64xf32>
    %304 = tpu.concatenate %287, %303 in 1 : vector<8x64xf32>, vector<8x64xf32> -> vector<8x128xf32>
    %305 = arith.truncf %304 : vector<8x128xf32> to vector<8x128xbf16>
    %cst_28 = arith.constant dense<0.000000e+00> : vector<8x512xf32>
    %306 = tpu.matmul %305, %4, %cst_28 {dimension_numbers = #tpu.dot_dimension_numbers<[1], [0], [0], [1], [0, 0, 1, 1], [], []>} : vector<8x128xbf16>, vector<128x512xbf16>, vector<8x512xf32> -> vector<8x512xf32>
    %307 = vector.extract_strided_slice %306 {offsets = [0, 0], sizes = [8, 256], strides = [1, 1]} : vector<8x512xf32> to vector<8x256xf32>
    %308 = vector.extract_strided_slice %0 {offsets = [0, 7], sizes = [8, 1], strides = [1, 1]} : vector<8x8xf32> to vector<8x1xf32>
    %309 = vector.broadcast %308 : vector<8x1xf32> to vector<8x256xf32>
    %310 = vector.broadcast %1 : vector<1x256xf32> to vector<8x256xf32>
    %311 = arith.mulf %309, %310 : vector<8x256xf32>
    %312 = vector.broadcast %2 : vector<1x256xf32> to vector<8x256xf32>
    %313 = arith.addf %311, %312 : vector<8x256xf32>
    %314 = arith.addf %307, %313 : vector<8x256xf32>
    %315 = vector.extract_strided_slice %306 {offsets = [0, 256], sizes = [8, 256], strides = [1, 1]} : vector<8x512xf32> to vector<8x256xf32>
    %316 = vector.broadcast %3 : vector<1x256xf32> to vector<8x256xf32>
    %317 = arith.addf %315, %316 : vector<8x256xf32>
    %318 = vector.extract_strided_slice %314 {offsets = [0, 0], sizes = [8, 192], strides = [1, 1]} : vector<8x256xf32> to vector<8x192xf32>
    %319 = arith.negf %318 : vector<8x192xf32>
    %320 = math.exp %319 : vector<8x192xf32>
    %cst_29 = arith.constant 1.000000e+00 : f32
    %321 = vector.broadcast %cst_29 : f32 to vector<8x192xf32>
    %322 = arith.addf %321, %320 : vector<8x192xf32>
    %323 = arith.divf %321, %322 : vector<8x192xf32>
    %324 = vector.extract_strided_slice %323 {offsets = [0, 0], sizes = [8, 64], strides = [1, 1]} : vector<8x192xf32> to vector<8x64xf32>
    %325 = vector.extract_strided_slice %323 {offsets = [0, 64], sizes = [8, 64], strides = [1, 1]} : vector<8x192xf32> to vector<8x64xf32>
    %326 = vector.extract_strided_slice %323 {offsets = [0, 128], sizes = [8, 64], strides = [1, 1]} : vector<8x192xf32> to vector<8x64xf32>
    %327 = vector.extract_strided_slice %314 {offsets = [0, 192], sizes = [8, 64], strides = [1, 1]} : vector<8x256xf32> to vector<8x64xf32>
    %328 = math.tanh %327 : vector<8x64xf32>
    %329 = arith.mulf %325, %285 : vector<8x64xf32>
    %330 = arith.mulf %324, %328 : vector<8x64xf32>
    %331 = arith.addf %329, %330 : vector<8x64xf32>
    %332 = math.tanh %331 : vector<8x64xf32>
    %333 = arith.mulf %326, %332 : vector<8x64xf32>
    %334 = vector.extract_strided_slice %317 {offsets = [0, 0], sizes = [8, 192], strides = [1, 1]} : vector<8x256xf32> to vector<8x192xf32>
    %335 = arith.negf %334 : vector<8x192xf32>
    %336 = math.exp %335 : vector<8x192xf32>
    %cst_30 = arith.constant 1.000000e+00 : f32
    %337 = vector.broadcast %cst_30 : f32 to vector<8x192xf32>
    %338 = arith.addf %337, %336 : vector<8x192xf32>
    %339 = arith.divf %337, %338 : vector<8x192xf32>
    %340 = vector.extract_strided_slice %339 {offsets = [0, 0], sizes = [8, 64], strides = [1, 1]} : vector<8x192xf32> to vector<8x64xf32>
    %341 = vector.extract_strided_slice %339 {offsets = [0, 64], sizes = [8, 64], strides = [1, 1]} : vector<8x192xf32> to vector<8x64xf32>
    %342 = vector.extract_strided_slice %339 {offsets = [0, 128], sizes = [8, 64], strides = [1, 1]} : vector<8x192xf32> to vector<8x64xf32>
    %343 = vector.extract_strided_slice %317 {offsets = [0, 192], sizes = [8, 64], strides = [1, 1]} : vector<8x256xf32> to vector<8x64xf32>
    %344 = math.tanh %343 : vector<8x64xf32>
    %345 = arith.mulf %341, %301 : vector<8x64xf32>
    %346 = arith.mulf %340, %344 : vector<8x64xf32>
    %347 = arith.addf %345, %346 : vector<8x64xf32>
    %348 = math.tanh %347 : vector<8x64xf32>
    %349 = arith.mulf %342, %348 : vector<8x64xf32>
    %350 = tpu.concatenate %333, %349 in 1 : vector<8x64xf32>, vector<8x64xf32> -> vector<8x128xf32>
    %351 = arith.truncf %350 : vector<8x128xf32> to vector<8x128xbf16>
    %cst_31 = arith.constant dense<0.000000e+00> : vector<8x512xf32>
    %352 = tpu.matmul %351, %4, %cst_31 {dimension_numbers = #tpu.dot_dimension_numbers<[1], [0], [0], [1], [0, 0, 1, 1], [], []>} : vector<8x128xbf16>, vector<128x512xbf16>, vector<8x512xf32> -> vector<8x512xf32>
    %353 = vector.extract_strided_slice %352 {offsets = [0, 256], sizes = [8, 256], strides = [1, 1]} : vector<8x512xf32> to vector<8x256xf32>
    %354 = vector.broadcast %3 : vector<1x256xf32> to vector<8x256xf32>
    %355 = arith.addf %353, %354 : vector<8x256xf32>
    %356 = vector.extract_strided_slice %355 {offsets = [0, 0], sizes = [8, 192], strides = [1, 1]} : vector<8x256xf32> to vector<8x192xf32>
    %357 = arith.negf %356 : vector<8x192xf32>
    %358 = math.exp %357 : vector<8x192xf32>
    %cst_32 = arith.constant 1.000000e+00 : f32
    %359 = vector.broadcast %cst_32 : f32 to vector<8x192xf32>
    %360 = arith.addf %359, %358 : vector<8x192xf32>
    %361 = arith.divf %359, %360 : vector<8x192xf32>
    %362 = vector.extract_strided_slice %361 {offsets = [0, 0], sizes = [8, 64], strides = [1, 1]} : vector<8x192xf32> to vector<8x64xf32>
    %363 = vector.extract_strided_slice %361 {offsets = [0, 64], sizes = [8, 64], strides = [1, 1]} : vector<8x192xf32> to vector<8x64xf32>
    %364 = vector.extract_strided_slice %361 {offsets = [0, 128], sizes = [8, 64], strides = [1, 1]} : vector<8x192xf32> to vector<8x64xf32>
    %365 = vector.extract_strided_slice %355 {offsets = [0, 192], sizes = [8, 64], strides = [1, 1]} : vector<8x256xf32> to vector<8x64xf32>
    %366 = math.tanh %365 : vector<8x64xf32>
    %367 = arith.mulf %363, %347 : vector<8x64xf32>
    %368 = arith.mulf %362, %366 : vector<8x64xf32>
    %369 = arith.addf %367, %368 : vector<8x64xf32>
    %370 = math.tanh %369 : vector<8x64xf32>
    %371 = arith.mulf %364, %370 : vector<8x64xf32>
    %372 = arith.truncf %371 : vector<8x64xf32> to vector<8x64xbf16>
    %c0_33 = arith.constant 0 : index
    %c0_34 = arith.constant 0 : index
    %373 = vector.load %arg5[%c0_33, %c0_34] : memref<64x256xbf16, #tpu.memory_space<vmem>>, vector<64x256xbf16>
    %cst_35 = arith.constant dense<0.000000e+00> : vector<8x256xf32>
    %374 = tpu.matmul %372, %373, %cst_35 {dimension_numbers = #tpu.dot_dimension_numbers<[1], [0], [0], [1], [0, 0, 1, 1], [], []>} : vector<8x64xbf16>, vector<64x256xbf16>, vector<8x256xf32> -> vector<8x256xf32>
    %c0_36 = arith.constant 0 : index
    %c0_37 = arith.constant 0 : index
    %375 = vector.load %arg6[%c0_36, %c0_37] : memref<1x256xf32, #tpu.memory_space<vmem>>, vector<1x256xf32>
    %376 = vector.broadcast %375 : vector<1x256xf32> to vector<8x256xf32>
    %377 = arith.addf %374, %376 : vector<8x256xf32>
    %c0_38 = arith.constant 0 : index
    %c0_39 = arith.constant 0 : index
    %378 = vector.load %arg7[%c0_38, %c0_39] : memref<8x256xf32, #tpu.memory_space<vmem>>, vector<8x256xf32>
    tpu.vector_store %arg7[%c0_38, %c0_39], %377 {strides = array<i32>} : memref<8x256xf32, #tpu.memory_space<vmem>>, vector<8x256xf32>,
    return
  }
}

</mosaic_0001>

<bundles_post_ra>
// kernel: seq_lstm_forward.1
= control target key start
LH: loop header
LB: loop body
LE: loop exit
PB: predicated region body
PF: predicated region fallthrough
CT: control target
= control target key end

     0   :  { %12 = vsyncpa [#allocation3], 0  ;;  %s3110_s0 = inlined_call_operand.hbm [shape: f32[8,8], index: 0, kind: input, shape index: {}]   ;;  %s3111_s1 = inlined_call_operand.vmem [shape: f32[1,256], index: 1, kind: input, shape index: {}]   ;;  %s3112_s2 = inlined_call_operand.hbm [shape: f32[1,256], index: 2, kind: input, shape index: {}]   ;;  %s3113_s3 = inlined_call_operand.hbm [shape: bf16[128,512], index: 3, kind: input, shape index: {}]   ;;  %s3114_s4 = inlined_call_operand.hbm [shape: f32[1,256], index: 4, kind: input, shape index: {}]   ;;  %s3115_s5 = inlined_call_operand.hbm [shape: bf16[64,256], index: 5, kind: input, shape index: {}]   ;;  %s3116_s6 = inlined_call_operand.hbm [shape: f32[1,256], index: 6, kind: input, shape index: {}]   ;;  %s3117_s7 = inlined_call_operand.vmem [shape: f32[8,256], index: 7, kind: output, shape index: {}]  }
   0x1   :  { %13 = vsyncpa [#allocation5], 0 }
   0x2   :  { %14 = vsyncpa [#allocation8], 0  ;;  %s34_s26 = sshll.u32 %s3112_s2, 4  ;;  %s35_s26 = int_to_ptr.hbm [resolvable:$true] %s34_s26 }
   0x3   :  { %15 = vsyncpa [#allocation11], 0  ;;  %s2463_s27 = smov [#allocation4]   ;;  %s58_s8 = sshll.u32 %s3114_s4, 4  ;;  %s59_s8 = int_to_ptr.hbm [resolvable:$true] %s58_s8 }
   0x4   :  { %s36_s28 = sshll.u32 %s2463_s27, 4  ;;  %s2464_s9 = smov [#allocation7]   ;;  %s37_s28 = int_to_ptr.vmem [resolvable:$true] %s36_s28 }
   0x5   :  { %39 = dma.hbm_to_vmem [thread:$0]  %s35_s26, 32, %s37_s28, [#allocation5]  }
   0x6   :  { %s60_s10 = sshll.u32 %s2464_s9, 4  ;;  %s21_s13 = sshll.u32 %s3110_s0, 4  ;;  %s61_s10 = int_to_ptr.vmem [resolvable:$true] %s60_s10  ;;  %s22_s13 = int_to_ptr.hbm [resolvable:$true] %s21_s13 }
   0x7   :  { %63 = dma.hbm_to_vmem [thread:$0]  %s59_s8, 32, %s61_s10, [#allocation8]  }
   0x8   :  { %s44_s15 = sshll.u32 %s3113_s3, 4  ;;  %s2465_s16 = smov [#allocation2]   ;;  %s45_s15 = int_to_ptr.hbm [resolvable:$true] %s44_s15 }
   0x9   :  { %s23_s17 = sshll.u32 %s2465_s16, 4  ;;  %s2466_s4 = smov [#allocation6]   ;;  %s24_s17 = int_to_ptr.vmem [resolvable:$true] %s23_s17 }
   0xa   :  { %26 = dma.hbm_to_vmem [thread:$0]  %s22_s13, 128, %s24_s17, [#allocation3]  }
   0xb   :  { %s46_s18 = sshll.u32 %s2466_s4, 4  ;;  %s2467_s19 = smov 256   ;;  %s47_s18 = int_to_ptr.vmem [resolvable:$true] %s46_s18 }
   0xc   :  { %s2468_s20 = smov 16   ;;  %s68_s22 = sshll.u32 %s3115_s5, 4  ;;  %s69_s22 = int_to_ptr.hbm [resolvable:$true] %s68_s22 }
   0xd   :  { %52 = dma.hbm_to_vmem [thread:$0]  %s45_s15, 4096, %s47_s18, [#allocation5], %s2467_s19, %s2467_s19, %s2468_s20  }
   0xe   :  { %s2469_s23 = smov [#allocation9]   ;;  %s82_s26 = sshll.u32 %s3116_s6, 4  ;;  %s83_s26 = int_to_ptr.hbm [resolvable:$true] %s82_s26 }
   0xf   :  { %s70_s24 = sshll.u32 %s2469_s23, 4  ;;  %s2470_s27 = smov 128   ;;  %s71_s24 = int_to_ptr.vmem [resolvable:$true] %s70_s24 }
  0x10   :  { %s2471_s28 = smov 8   ;;  %s2472_s29 = smov [#allocation10]  }
  0x11   :  { %76 = dma.hbm_to_vmem [thread:$0]  %s69_s22, 1024, %s71_s24, [#allocation8], %s2470_s27, %s2470_s27, %s2471_s28  }
  0x12   :  { %s84_s30 = sshll.u32 %s2472_s29, 4  ;;  %s85_s30 = int_to_ptr.vmem [resolvable:$true] %s84_s30 }
  0x13   :  { %87 = dma.hbm_to_vmem [thread:$0]  %s83_s26, 32, %s85_s30, [#allocation11]  }
  0x14   :  { %2455 = dma.done.wait [#allocation3], 128  }
  0x15   :  { %2456 = vsyncadd [#allocation3], 4294967168 }
  0x16   :  { %2457 = dma.done.wait [#allocation5], 4128  }
  0x17   :  { %2458 = vsyncadd [#allocation5], 4294963168 }
  0x18   :  { %2459 = dma.done.wait [#allocation8], 1056  }
  0x19   :  { %2460 = vsyncadd [#allocation8], 4294966240 }
  0x1a   :  { %2461 = dma.done.wait [#allocation11], 32  }
  0x1b   :  { %2462 = vsyncadd [#allocation11], 4294967264  ;;  %v2473_v0 = vmov 0   ;;  %v2540_v1 = vld [vmem:[#allocation2] sm:$0xff]  ;;  %v115_v3 = vld [vmem:[#allocation4] sm:$0x3] }
  0x1c   :  { %2109 = vset.pattern.permute.xlu0 %v2473_v0  ;;  %v114_v2 = vld [vmem:[%s3111_s1] sm:$0x3]  ;;  %v2548_v5 = vperm.slane %v115_v3, 1  ;;  %s2474_s8 = smov 64   ;;  %v2558_v11 = vperm.slane %v115_v3, 0  ;;  %vm224_vm8 = vcmask 523264  }
  0x1d   :  { %151 = vperm.xlu0 %2109, %v2540_v1   ;;  %v2546_v4 = vperm.slane %v114_v2, 1  ;;  %v2556_v10 = vperm.slane %v114_v2, 0  ;;  %v1960_v29 = vld [vmem:[#allocation6 + $0xe0] sm:$0xf]  ;;  %v2080_v30 = vld [vmem:[#allocation6 + $0xec] sm:$0xf0]  ;;  %vm1974_vm9 = vmpackc.low %vm224_vm8, %vm224_vm8 }
  0x1e   :  { %v2078_v31 = vld [vmem:[#allocation6 + $0xe4] sm:$0xf]  ;;  %v2566_v32 = vor.u32 %v2080_v30, %v1960_v29  ;;  %v1962_v33 = vld [vmem:[#allocation6 + $0xf0] sm:$0xf0]  ;;  %v1968_v34 = vld [vmem:[#allocation6 + $0xe8] sm:$0xf] }
  0x1f   :  { %v2081_v35 = vld [vmem:[#allocation6 + $0xf4] sm:$0xf0]  ;;  %v2568_v36 = vor.u32 %v2078_v31, %v1962_v33  ;;  %v2079_v38 = vld [vmem:[#allocation6 + $0xec] sm:$0xf]  ;;  %v1970_v39 = vld [vmem:[#allocation6 + $0xf8] sm:$0xf0] }
  0x20   :  { %v2570_v37 = vor.u32 %v2081_v35, %v1968_v34  ;;  %v1944_v40 = vld [vmem:[#allocation6 + $0xc0] sm:$0xf]  ;;  %387 = vmatpush.bf16.msra.mxu0 %v2566_v32  ;;  %v2573_v41 = vor.u32 %v2079_v38, %v1970_v39  ;;  %v2076_v42 = vld [vmem:[#allocation6 + $0xcc] sm:$0xf0]  ;;  %v2074_v43 = vld [vmem:[#allocation6 + $0xc4] sm:$0xf] }
  0x21   :  { %v1946_v44 = vld [vmem:[#allocation6 + $0xd0] sm:$0xf0]  ;;  %400 = vmatpush.bf16.msra.mxu1 %v2568_v36  ;;  %v2577_v45 = vor.u32 %v2076_v42, %v1944_v40  ;;  %v1952_v47 = vld [vmem:[#allocation6 + $0xc8] sm:$0xf]  ;;  %v2077_v48 = vld [vmem:[#allocation6 + $0xd4] sm:$0xf0] }
  0x22   :  { %413 = vmatpush.bf16.msra.mxu2 %v2570_v37  ;;  %v2579_v46 = vor.u32 %v2074_v43, %v1946_v44  ;;  %v2075_v49 = vld [vmem:[#allocation6 + $0xcc] sm:$0xf]  ;;  %426 = vmatpush.bf16.msra.mxu3 %v2573_v41  ;;  %v2582_v50 = vor.u32 %v2077_v48, %v1952_v47  ;;  %v1954_v51 = vld [vmem:[#allocation6 + $0xd8] sm:$0xf0]  ;;  %v1928_v52 = vld [vmem:[#allocation6 + $0xa0] sm:$0xf] }
  0x23   :  { %v2072_v53 = vld [vmem:[#allocation6 + $0xac] sm:$0xf0]  ;;  %v2584_v54 = vor.u32 %v2075_v49, %v1954_v51  ;;  %v2070_v55 = vld [vmem:[#allocation6 + $0xa4] sm:$0xf]  ;;  %v1930_v56 = vld [vmem:[#allocation6 + $0xb0] sm:$0xf0] }
  0x24   :  { %v1936_v57 = vld [vmem:[#allocation6 + $0xa8] sm:$0xf]  ;;  %388 = vmatpush.bf16.msra.mxu0 %v2577_v45  ;;  %v2587_v58 = vor.u32 %v2072_v53, %v1928_v52  ;;  %v2073_v59 = vld [vmem:[#allocation6 + $0xb4] sm:$0xf0]  ;;  %v2071_v60 = vld [vmem:[#allocation6 + $0xac] sm:$0xf]  ;;  %v2591_v62 = vor.u32 %v2070_v55, %v1930_v56 }
  0x25   :  { %v1938_v61 = vld [vmem:[#allocation6 + $0xb8] sm:$0xf0]  ;;  %401 = vmatpush.bf16.msra.mxu1 %v2579_v46  ;;  %v2593_v63 = vor.u32 %v2073_v59, %v1936_v57  ;;  %v1912_v0 = vld [vmem:[#allocation6 + $0x80] sm:$0xf]  ;;  %v2068_v2 = vld [vmem:[#allocation6 + $0x8c] sm:$0xf0] }
  0x26   :  { %414 = vmatpush.bf16.msra.mxu2 %v2582_v50  ;;  %v2066_v3 = vld [vmem:[#allocation6 + $0x84] sm:$0xf]  ;;  %427 = vmatpush.bf16.msra.mxu3 %v2584_v54  ;;  %v1880_v31 = vld [vmem:[#allocation6 + $0x40] sm:$0xf]  ;;  %v2060_v33 = vld [vmem:[#allocation6 + $0x4c] sm:$0xf0] }
  0x27   :  { %v2058_v34 = vld [vmem:[#allocation6 + $0x44] sm:$0xf]  ;;  %v1882_v38 = vld [vmem:[#allocation6 + $0x50] sm:$0xf0]  ;;  %v1888_v39 = vld [vmem:[#allocation6 + $0x48] sm:$0xf]  ;;  %v2624_v47 = vor.u32 %v2060_v33, %v1880_v31 }
  0x28   :  { %389 = vmatpush.bf16.msra.mxu0 %v2587_v58  ;;  %v2061_v40 = vld [vmem:[#allocation6 + $0x54] sm:$0xf0]  ;;  %v2059_v42 = vld [vmem:[#allocation6 + $0x4c] sm:$0xf]  ;;  %v1890_v43 = vld [vmem:[#allocation6 + $0x58] sm:$0xf0]  ;;  %v2628_v48 = vor.u32 %v2058_v34, %v1882_v38 }
  0x29   :  { %402 = vmatpush.bf16.msra.mxu1 %v2591_v62  ;;  %v2630_v49 = vor.u32 %v2061_v40, %v1888_v39  ;;  %v1864_v51 = vld [vmem:[#allocation6 + $0x20] sm:$0xf]  ;;  %v2056_v52 = vld [vmem:[#allocation6 + $0x2c] sm:$0xf0]  ;;  %v2054_v53 = vld [vmem:[#allocation6 + $0x24] sm:$0xf]  ;;  %v2633_v55 = vor.u32 %v2059_v42, %v1890_v43 }
  0x2a   :  { %415 = vmatpush.bf16.msra.mxu2 %v2593_v63  ;;  %v1872_v56 = vld [vmem:[#allocation6 + $0x28] sm:$0xf]  ;;  %v2057_v57 = vld [vmem:[#allocation6 + $0x34] sm:$0xf0]  ;;  %v2051_v34 = vld [vmem:[#allocation6 + $0xc] sm:$0xf] }
  0x2b   :  { %v1858_v38 = vld [vmem:[#allocation6 + $0x18] sm:$0xf0]  ;;  %v2475_v39 = vmov 1  }
  0x2c   :  { %2110 = vset.pattern.permute.xlu2 %v2475_v39 }
  0x2d   :  { %440 = vperm.xlu2 %2110, %v2540_v1  }
  0x8f   :  { %v152_v6 = vpop.permute.xlu0 %151 }
  0x90   :  { %v160_v7 = vmul.f32 %v2546_v4, %v152_v6  ;;  %v159_v12 = vmul.f32 %v2556_v10, %v152_v6  ;;  %v2596_v6 = vor.u32 %v2071_v60, %v1938_v61  ;;  %v2055_v60 = vld [vmem:[#allocation6 + $0x2c] sm:$0xf]  ;;  %v1874_v61 = vld [vmem:[#allocation6 + $0x38] sm:$0xf0] }
  0x92   :  { %v2552_v8 = vadd.f32 %v2548_v5, %v160_v7  ;;  %v166_v13 = vadd.f32 %v2558_v11, %v159_v12  ;;  %v1914_v7 = vld [vmem:[#allocation6 + $0x90] sm:$0xf0]  ;;  %v2069_v12 = vld [vmem:[#allocation6 + $0x94] sm:$0xf0]  ;;  %428 = vmatpush.bf16.msra.mxu3 %v2596_v6 }
  0x94   :  { %2117 = vtanh.f32 %v2552_v8  ;;  %v1844_v14 = vmul.f32 -1.442695, %v166_v13  ;;  %v2067_v13 = vld [vmem:[#allocation6 + $0x8c] sm:$0xf] }
  0x96   :  { %2119 = vpow2.f32 %v1844_v14  ;;  %v1922_v14 = vld [vmem:[#allocation6 + $0x98] sm:$0xf0] }
  0x9a   :  { %v2118_v9 = vpop.eup %2117 }
  0x9b   :  { %209 = vrot.lane.b32.xlu0 %v2118_v9, %s2474_s8  ;;  %v1920_v9 = vld [vmem:[#allocation6 + $0x88] sm:$0xf] }
  0x9c   :  { %v2120_v15 = vpop.eup %2119 }
  0x9d   :  { %v174_v16 = vadd.f32 1.0, %v2120_v15  ;;  %v2599_v15 = vor.u32 %v2068_v2, %v1912_v0  ;;  %v2638_v2 = vor.u32 %v2056_v52, %v1864_v51 }
  0x9f   :  { %2121 = vrcp.f32 %v174_v16  ;;  %v187_v22 = vand.u32 2147483648, %v174_v16  ;;  %vm181_vm1 = vweird.f32 %v174_v16  ;;  %v185_v23 = vand.u32 2147483647, %v174_v16  ;;  %390 = vmatpush.bf16.msra.mxu0 %v2599_v15 }
  0xa1   :  { %v188_v25 = vor.u32 1.1754944e-38, %v187_v22  ;;  %vm186_vm3 = vcmp.eq.f32.partialorder %v185_v23, 8.507059e+37  ;;  %v1898_v22 = vld [vmem:[#allocation6 + $0x70] sm:$0xf0]  ;;  %v1904_v23 = vld [vmem:[#allocation6 + $0x68] sm:$0xf] }
  0xa5   :  { %v2122_v17 = vpop.eup %2121 }
  0xa6   :  { %v177_v18 = vmul.f32 %v2122_v17, %v174_v16  ;;  %vm182_vm0 = vweird.f32 %v2122_v17  ;;  %v2603_v16 = vor.u32 %v2066_v3, %v1914_v7  ;;  %v2644_v7 = vor.u32 %v2057_v57, %v1872_v56 }
  0xa7   :  { %vm183_vm2 = vmor %vm181_vm1, %vm182_vm0 }
  0xa8   :  { %v178_v19 = vsub.f32 1.0, %v177_v18  ;;  %v1896_v18 = vld [vmem:[#allocation6 + $0x60] sm:$0xf]  ;;  %403 = vmatpush.bf16.msra.mxu1 %v2603_v16 }
  0xaa   :  { %v179_v20 = vmul.f32 %v2122_v17, %v178_v19  ;;  %v2064_v19 = vld [vmem:[#allocation6 + $0x6c] sm:$0xf0] }
  0xac   :  { %v180_v21 = vadd.f32 %v2122_v17, %v179_v20  ;;  %v2062_v20 = vld [vmem:[#allocation6 + $0x64] sm:$0xf] }
  0xad   :  { %v2615_v29 = vor.u32 %v2062_v20, %v1898_v22  ;;  %v2052_v20 = vld [vmem:[#allocation6 + $0xc] sm:$0xf0]  ;;  %v2050_v22 = vld [vmem:[#allocation6 + $0x4] sm:$0xf] }
  0xae   :  { %v184_v24 = vsel %vm183_vm2, %v2122_v17, %v180_v21  ;;  %v2605_v17 = vor.u32 %v2069_v12, %v1920_v9  ;;  %v2608_v21 = vor.u32 %v2067_v13, %v1922_v14  ;;  %v2648_v9 = vor.u32 %v2055_v60, %v1874_v61 }
  0xaf   :  { %v2562_v27 = vsel %vm186_vm3, %v188_v25, %v184_v24  ;;  %v2065_v24 = vld [vmem:[#allocation6 + $0x74] sm:$0xf0]  ;;  %v2063_v25 = vld [vmem:[#allocation6 + $0x6c] sm:$0xf]  ;;  %404 = vmatpush.bf16.msra.mxu1 %v2615_v29  ;;  %v1845_v13 = vmul.f32 -1.442695, %v2552_v8  ;;  %v2663_v8 = vor.u32 %v2051_v34, %v1858_v38 }
  0xb0   :  { %416 = vmatpush.bf16.msra.mxu2 %v2605_v17  ;;  %v2617_v30 = vor.u32 %v2065_v24, %v1904_v23  ;;  %429 = vmatpush.bf16.msra.mxu3 %v2608_v21  ;;  %v207_v44 = vmul.f32 0.0, %v2562_v27  ;;  %v1850_v24 = vld [vmem:[#allocation6 + $0x10] sm:$0xf0] }
  0xb1   :  { %v2658_v31 = vor.u32 %v2050_v22, %v1850_v24  ;;  %v116_v22 = vld [vmem:[#allocation7] sm:$0x3] }
  0xb2   :  { %v2740_v24 = vperm.slane %v116_v22, 1 }
  0xb3   :  { %405 = vmatpush.bf16.msra.mxu1 %v2628_v48 }
  0xb4   :  { %417 = vmatpush.bf16.msra.mxu2 %v2617_v30 }
  0xb8   :  { %418 = vmatpush.bf16.msra.mxu2 %v2630_v49 }
  0xbc   :  { %419 = vmatpush.bf16.msra.mxu2 %v2644_v7 }
 0x10d   :  { %v210_v26 = vpop.permute.xlu0 %209 }
 0x10e   :  { %v212_v28 = vmul.f32 %v210_v26, %v2562_v27  ;;  %v1906_v26 = vld [vmem:[#allocation6 + $0x78] sm:$0xf0]  ;;  %v1866_v27 = vld [vmem:[#allocation6 + $0x30] sm:$0xf0] }
 0x10f   :  { %v2620_v35 = vor.u32 %v2063_v25, %v1906_v26  ;;  %v2642_v3 = vor.u32 %v2054_v53, %v1866_v27  ;;  %v1856_v25 = vld [vmem:[#allocation6 + $0x8] sm:$0xf]  ;;  %v2053_v26 = vld [vmem:[#allocation6 + $0x14] sm:$0xf0] }
 0x110   :  { %214 = vrot.lane.b32.xlu1 %v212_v28, %s2474_s8  ;;  %v2611_v28 = vor.u32 %v2064_v19, %v1896_v18  ;;  %v1848_v19 = vld [vmem:[#allocation6] sm:$0xf]  ;;  %v2660_v33 = vor.u32 %v2053_v26, %v1856_v25 }
 0x111   :  { %430 = vmatpush.bf16.msra.mxu3 %v2620_v35  ;;  %406 = vmatpush.bf16.msra.mxu1 %v2642_v3  ;;  %v2656_v23 = vor.u32 %v2052_v20, %v1848_v19 }
 0x112   :  { %391 = vmatpush.bf16.msra.mxu0 %v2611_v28  ;;  %420 = vmatpush.bf16.msra.mxu2 %v2660_v33 }
 0x115   :  { %431 = vmatpush.bf16.msra.mxu3 %v2633_v55  ;;  %407 = vmatpush.bf16.msra.mxu1 %v2658_v31 }
 0x116   :  { %392 = vmatpush.bf16.msra.mxu0 %v2624_v47  ;;  %600 = vmatpush.bf16.msrb.mxu2 %v2570_v37 }
 0x119   :  { %432 = vmatpush.bf16.msra.mxu3 %v2648_v9  ;;  %587 = vmatpush.bf16.msrb.mxu1 %v2568_v36 }
 0x11a   :  { %393 = vmatpush.bf16.msra.mxu0 %v2638_v2  ;;  %601 = vmatpush.bf16.msrb.mxu2 %v2582_v50 }
 0x11d   :  { %433 = vmatpush.bf16.msra.mxu3 %v2663_v8  ;;  %588 = vmatpush.bf16.msrb.mxu1 %v2579_v46 }
 0x11e   :  { %394 = vmatpush.bf16.msra.mxu0 %v2656_v23  ;;  %602 = vmatpush.bf16.msrb.mxu2 %v2593_v63 }
 0x121   :  { %613 = vmatpush.bf16.msrb.mxu3 %v2573_v41  ;;  %589 = vmatpush.bf16.msrb.mxu1 %v2591_v62 }
 0x122   :  { %574 = vmatpush.bf16.msrb.mxu0 %v2566_v32  ;;  %603 = vmatpush.bf16.msrb.mxu2 %v2605_v17 }
 0x125   :  { %614 = vmatpush.bf16.msrb.mxu3 %v2584_v54  ;;  %590 = vmatpush.bf16.msrb.mxu1 %v2603_v16 }
 0x126   :  { %575 = vmatpush.bf16.msrb.mxu0 %v2577_v45  ;;  %604 = vmatpush.bf16.msrb.mxu2 %v2617_v30 }
 0x129   :  { %615 = vmatpush.bf16.msrb.mxu3 %v2596_v6  ;;  %591 = vmatpush.bf16.msrb.mxu1 %v2615_v29 }
 0x12a   :  { %576 = vmatpush.bf16.msrb.mxu0 %v2587_v58  ;;  %605 = vmatpush.bf16.msrb.mxu2 %v2630_v49 }
 0x12d   :  { %616 = vmatpush.bf16.msrb.mxu3 %v2608_v21  ;;  %592 = vmatpush.bf16.msrb.mxu1 %v2628_v48 }
 0x12e   :  { %577 = vmatpush.bf16.msrb.mxu0 %v2599_v15  ;;  %606 = vmatpush.bf16.msrb.mxu2 %v2644_v7 }
 0x131   :  { %617 = vmatpush.bf16.msrb.mxu3 %v2620_v35  ;;  %593 = vmatpush.bf16.msrb.mxu1 %v2642_v3 }
 0x132   :  { %578 = vmatpush.bf16.msrb.mxu0 %v2611_v28  ;;  %607 = vmatpush.bf16.msrb.mxu2 %v2660_v33 }
 0x135   :  { %618 = vmatpush.bf16.msrb.mxu3 %v2633_v55  ;;  %594 = vmatpush.bf16.msrb.mxu1 %v2658_v31 }
 0x136   :  { %579 = vmatpush.bf16.msrb.mxu0 %v2624_v47 }
 0x139   :  { %619 = vmatpush.bf16.msrb.mxu3 %v2648_v9 }
 0x13a   :  { %580 = vmatpush.bf16.msrb.mxu0 %v2638_v2 }
 0x13d   :  { %620 = vmatpush.bf16.msrb.mxu3 %v2663_v8 }
 0x13e   :  { %581 = vmatpush.bf16.msrb.mxu0 %v2656_v23 }
 0x182   :  { %v215_v59 = vpop.permute.xlu1 %214 }
 0x183   :  { %v2635_v0 = vadd.f32 %v215_v59, %v207_v44 }
 0x185   :  { %2123 = vtanh.f32 %v2635_v0 }
 0x186   :  { %2125 = vpow2.f32 %v1845_v13 }
 0x18b   :  { %v2124_v12 = vpop.eup %2123 }
 0x18c   :  { %220 = vrot.lane.b32.xlu1 %v2124_v12, %s2474_s8  ;;  %v2126_v14 = vpop.eup %2125  ;;  %v441_v12 = vpop.permute.xlu2 %440 }
 0x18d   :  { %v175_v18 = vadd.f32 1.0, %v2126_v14  ;;  %v444_v13 = vmul.f32 %v441_v12, %v2546_v4 }
 0x18f   :  { %2127 = vrcp.f32 %v175_v18  ;;  %v202_v52 = vand.u32 2147483648, %v175_v18  ;;  %vm196_vm5 = vweird.f32 %v175_v18  ;;  %v200_v53 = vand.u32 2147483647, %v175_v18 }
 0x190   :  { %v446_v14 = vadd.f32 %v444_v13, %v2548_v5 }
 0x191   :  { %v203_v56 = vor.u32 1.1754944e-38, %v202_v52  ;;  %vm201_vm7 = vcmp.eq.f32.partialorder %v200_v53, 8.507059e+37 }
 0x195   :  { %v2128_v40 = vpop.eup %2127 }
 0x196   :  { %v192_v42 = vmul.f32 %v2128_v40, %v175_v18  ;;  %vm197_vm4 = vweird.f32 %v2128_v40 }
 0x197   :  { %vm198_vm6 = vmor %vm196_vm5, %vm197_vm4 }
 0x198   :  { %v193_v43 = vsub.f32 1.0, %v192_v42 }
 0x19a   :  { %v194_v44 = vmul.f32 %v2128_v40, %v193_v43 }
 0x19c   :  { %v195_v51 = vadd.f32 %v2128_v40, %v194_v44 }
 0x19e   :  { %v199_v27 = vsel %vm198_vm6, %v2128_v40, %v195_v51  ;;  %v2748_v51 = vperm.slane %v116_v22, 0 }
 0x19f   :  { %v204_v57 = vsel %vm201_vm7, %v203_v56, %v199_v27  ;;  %v443_v27 = vmul.f32 %v441_v12, %v2556_v10 }
 0x1a1   :  { %v445_v56 = vadd.f32 %v443_v27, %v2558_v11 }
 0x1fe   :  { %v221_v59 = vpop.permute.xlu1 %220 }
 0x1ff   :  { %v223_v60 = vmul.f32 %v221_v59, %v204_v57 }
 0x201   :  { %v1975_v61 = vpack.c.bf16 %v223_v60, %v223_v60 }
 0x203   :  { %1976 = vmatmul.msk.bf16.vlgmr.msra.gmra.mxu0 %vm1974_vm9, %v1975_v61  ;;  %1979 = vmatmul.msk.bf16.vlgmr.msra.gmra.mxu1 %vm1974_vm9, %v1975_v61 }
 0x204   :  { %1982 = vmatmul.msk.bf16.vlgmr.msra.gmra.mxu2 %vm1974_vm9, %v1975_v61  ;;  %1985 = vmatmul.msk.bf16.vlgmr.msra.gmra.mxu3 %vm1974_vm9, %v1975_v61 }
 0x205   :  { %756 = vmatpush.bf16.msra.mxu0 %v2566_v32  ;;  %769 = vmatpush.bf16.msra.mxu1 %v2568_v36 }
 0x206   :  { %782 = vmatpush.bf16.msra.mxu2 %v2570_v37  ;;  %795 = vmatpush.bf16.msra.mxu3 %v2573_v41 }
 0x209   :  { %757 = vmatpush.bf16.msra.mxu0 %v2577_v45  ;;  %770 = vmatpush.bf16.msra.mxu1 %v2579_v46 }
 0x20a   :  { %783 = vmatpush.bf16.msra.mxu2 %v2582_v50  ;;  %796 = vmatpush.bf16.msra.mxu3 %v2584_v54 }
 0x20d   :  { %758 = vmatpush.bf16.msra.mxu0 %v2587_v58  ;;  %771 = vmatpush.bf16.msra.mxu1 %v2591_v62 }
 0x20e   :  { %784 = vmatpush.bf16.msra.mxu2 %v2593_v63  ;;  %797 = vmatpush.bf16.msra.mxu3 %v2596_v6 }
 0x211   :  { %759 = vmatpush.bf16.msra.mxu0 %v2599_v15  ;;  %772 = vmatpush.bf16.msra.mxu1 %v2603_v16 }
 0x212   :  { %785 = vmatpush.bf16.msra.mxu2 %v2605_v17  ;;  %798 = vmatpush.bf16.msra.mxu3 %v2608_v21 }
 0x215   :  { %760 = vmatpush.bf16.msra.mxu0 %v2611_v28  ;;  %773 = vmatpush.bf16.msra.mxu1 %v2615_v29 }
 0x216   :  { %786 = vmatpush.bf16.msra.mxu2 %v2617_v30  ;;  %799 = vmatpush.bf16.msra.mxu3 %v2620_v35 }
 0x219   :  { %761 = vmatpush.bf16.msra.mxu0 %v2624_v47  ;;  %774 = vmatpush.bf16.msra.mxu1 %v2628_v48 }
 0x21a   :  { %787 = vmatpush.bf16.msra.mxu2 %v2630_v49  ;;  %800 = vmatpush.bf16.msra.mxu3 %v2633_v55 }
 0x21d   :  { %762 = vmatpush.bf16.msra.mxu0 %v2638_v2  ;;  %775 = vmatpush.bf16.msra.mxu1 %v2642_v3 }
 0x21e   :  { %788 = vmatpush.bf16.msra.mxu2 %v2644_v7  ;;  %801 = vmatpush.bf16.msra.mxu3 %v2648_v9 }
 0x221   :  { %763 = vmatpush.bf16.msra.mxu0 %v2656_v23  ;;  %776 = vmatpush.bf16.msra.mxu1 %v2658_v31 }
 0x222   :  { %789 = vmatpush.bf16.msra.mxu2 %v2660_v33  ;;  %802 = vmatpush.bf16.msra.mxu3 %v2663_v8 }
 0x280   :  { %v396_v18 = vpop.f32.mrf.mxu0  ;;  %v409_v19 = vpop.f32.mrf.mxu1 }
 0x281   :  { %v2737_v20 = vadd.f32 %v446_v14, %v409_v19  ;;  %v447_v59 = vadd.f32 %v445_v56, %v396_v18 }
 0x283   :  { %2129 = vtanh.f32 %v2737_v20  ;;  %v1986_v61 = vmul.f32 -1.442695, %v447_v59 }
 0x287   :  { %v422_v25 = vpop.f32.mrf.mxu2  ;;  %v435_v26 = vpop.f32.mrf.mxu3 }
 0x288   :  { %v2743_v34 = vadd.f32 %v2740_v24, %v435_v26  ;;  %v398_v38 = vpop.f32.mrf.mxu0  ;;  %v411_v39 = vpop.f32.mrf.mxu1  ;;  %v454_v52 = vadd.f32 %v2748_v51, %v422_v25 }
 0x289   :  { %v2130_v40 = vpop.eup %2129 }
 0x28a   :  { %2131 = vtanh.f32 %v2743_v34  ;;  %497 = vrot.lane.b32.xlu0 %v2130_v40, %s2474_s8  ;;  %v1988_v53 = vmul.f32 -1.442695, %v454_v52 }
 0x28c   :  { %2133 = vpow2.f32 %v1988_v53 }
 0x28f   :  { %v424_v42 = vpop.f32.mrf.mxu2  ;;  %v437_v43 = vpop.f32.mrf.mxu3 }
 0x290   :  { %v2132_v44 = vpop.eup %2131 }
 0x291   :  { %553 = vrot.lane.b32.xlu2 %v2132_v44, %s2474_s8 }
 0x292   :  { %v2134_v57 = vpop.eup %2133 }
 0x293   :  { %v518_v60 = vadd.f32 1.0, %v2134_v57 }
 0x295   :  { %2135 = vrcp.f32 %v518_v60  ;;  %v531_v39 = vand.u32 2147483648, %v518_v60  ;;  %vm525_vm11 = vweird.f32 %v518_v60  ;;  %v529_v12 = vand.u32 2147483647, %v518_v60 }
 0x296   :  { %2137 = vpow2.f32 %v1986_v61 }
 0x297   :  { %v532_v18 = vor.u32 1.1754944e-38, %v531_v39  ;;  %vm530_vm13 = vcmp.eq.f32.partialorder %v529_v12, 8.507059e+37 }
 0x29b   :  { %v2136_v13 = vpop.eup %2135 }
 0x29c   :  { %v521_v14 = vmul.f32 %v2136_v13, %v518_v60  ;;  %v2138_v19 = vpop.eup %2137  ;;  %vm526_vm10 = vweird.f32 %v2136_v13 }
 0x29d   :  { %v462_v26 = vadd.f32 1.0, %v2138_v19  ;;  %vm527_vm12 = vmor %vm525_vm11, %vm526_vm10 }
 0x29e   :  { %v522_v22 = vsub.f32 1.0, %v521_v14 }
 0x29f   :  { %2139 = vrcp.f32 %v462_v26  ;;  %v475_v59 = vand.u32 2147483648, %v462_v26  ;;  %vm469_vm15 = vweird.f32 %v462_v26  ;;  %v473_v61 = vand.u32 2147483647, %v462_v26 }
 0x2a0   :  { %v523_v38 = vmul.f32 %v2136_v13, %v522_v22 }
 0x2a1   :  { %v476_v60 = vor.u32 1.1754944e-38, %v475_v59  ;;  %vm474_vm1 = vcmp.eq.f32.partialorder %v473_v61, 8.507059e+37 }
 0x2a2   :  { %v524_v25 = vadd.f32 %v2136_v13, %v523_v38 }
 0x2a4   :  { %v528_v42 = vsel %vm527_vm12, %v2136_v13, %v524_v25 }
 0x2a5   :  { %v2140_v40 = vpop.eup %2139  ;;  %v533_v52 = vsel %vm530_vm13, %v532_v18, %v528_v42 }
 0x2a6   :  { %v465_v43 = vmul.f32 %v2140_v40, %v462_v26  ;;  %vm470_vm14 = vweird.f32 %v2140_v40  ;;  %v551_v12 = vmul.f32 0.0, %v533_v52 }
 0x2a7   :  { %vm471_vm0 = vmor %vm469_vm15, %vm470_vm14 }
 0x2a8   :  { %v466_v27 = vsub.f32 1.0, %v465_v43  ;;  %v1989_v43 = vmul.f32 -1.442695, %v2743_v34 }
 0x2aa   :  { %v467_v56 = vmul.f32 %v2140_v40, %v466_v27 }
 0x2ac   :  { %v468_v57 = vadd.f32 %v2140_v40, %v467_v56 }
 0x2ae   :  { %v472_v14 = vsel %vm471_vm0, %v2140_v40, %v468_v57 }
 0x2af   :  { %v477_v19 = vsel %vm474_vm1, %v476_v60, %v472_v14 }
 0x2b0   :  { %v495_v38 = vmul.f32 %v477_v19, %v2635_v0 }
 0x2eb   :  { %v554_v44 = vpop.permute.xlu2 %553 }
 0x2ec   :  { %v556_v53 = vmul.f32 %v554_v44, %v533_v52 }
 0x2ee   :  { %558 = vrot.lane.b32.xlu1 %v556_v53, %s2474_s8 }
 0x2fc   :  { %v498_v13 = vpop.permute.xlu0 %497 }
 0x2fd   :  { %v500_v22 = vmul.f32 %v498_v13, %v477_v19 }
 0x2ff   :  { %502 = vrot.lane.b32.xlu2 %v500_v22, %s2474_s8  ;;  %v1987_v22 = vmul.f32 -1.442695, %v2737_v20 }
 0x359   :  { %v503_v25 = vpop.permute.xlu2 %502 }
 0x35a   :  { %v2756_v39 = vadd.f32 %v503_v25, %v495_v38 }
 0x35c   :  { %2141 = vtanh.f32 %v2756_v39 }
 0x360   :  { %v559_v42 = vpop.permute.xlu1 %558 }
 0x361   :  { %v2759_v18 = vadd.f32 %v559_v42, %v551_v12  ;;  %v2476_v12 = vmov 2  }
 0x362   :  { %v2142_v26 = vpop.eup %2141  ;;  %2111 = vset.pattern.permute.xlu0 %v2476_v12 }
 0x363   :  { %2143 = vtanh.f32 %v2759_v18  ;;  %508 = vrot.lane.b32.xlu1 %v2142_v26, %s2474_s8 }
 0x364   :  { %2145 = vpow2.f32 %v1989_v43 }
 0x369   :  { %v2144_v40 = vpop.eup %2143 }
 0x36a   :  { %564 = vrot.lane.b32.xlu0 %v2144_v40, %s2474_s8  ;;  %v2146_v0 = vpop.eup %2145 }
 0x36b   :  { %v519_v44 = vadd.f32 1.0, %v2146_v0 }
 0x36d   :  { %2147 = vrcp.f32 %v519_v44  ;;  %v546_v59 = vand.u32 2147483648, %v519_v44  ;;  %vm540_vm3 = vweird.f32 %v519_v44  ;;  %v544_v61 = vand.u32 2147483647, %v519_v44 }
 0x36e   :  { %2149 = vpow2.f32 %v1987_v22 }
 0x36f   :  { %v547_v60 = vor.u32 1.1754944e-38, %v546_v59  ;;  %vm545_vm5 = vcmp.eq.f32.partialorder %v544_v61, 8.507059e+37 }
 0x372   :  { %627 = vperm.xlu0 %2111, %v2540_v1  }
 0x373   :  { %v2148_v53 = vpop.eup %2147 }
 0x374   :  { %v536_v27 = vmul.f32 %v2148_v53, %v519_v44  ;;  %vm541_vm2 = vweird.f32 %v2148_v53  ;;  %v2150_v38 = vpop.eup %2149 }
 0x375   :  { %vm542_vm4 = vmor %vm540_vm3, %vm541_vm2  ;;  %v463_v25 = vadd.f32 1.0, %v2150_v38 }
 0x376   :  { %v537_v52 = vsub.f32 1.0, %v536_v27 }
 0x377   :  { %2151 = vrcp.f32 %v463_v25  ;;  %v490_v44 = vand.u32 2147483648, %v463_v25  ;;  %vm484_vm7 = vweird.f32 %v463_v25 }
 0x378   :  { %v538_v56 = vmul.f32 %v2148_v53, %v537_v52 }
 0x379   :  { %v491_v20 = vor.u32 1.1754944e-38, %v490_v44 }
 0x37a   :  { %v539_v57 = vadd.f32 %v2148_v53, %v538_v56 }
 0x37c   :  { %v543_v14 = vsel %vm542_vm4, %v2148_v53, %v539_v57  ;;  %v488_v53 = vand.u32 2147483647, %v463_v25 }
 0x37d   :  { %v548_v13 = vsel %vm545_vm5, %v547_v60, %v543_v14  ;;  %v2152_v42 = vpop.eup %2151 }
 0x37e   :  { %v480_v26 = vmul.f32 %v2152_v42, %v463_v25  ;;  %vm485_vm6 = vweird.f32 %v2152_v42  ;;  %vm489_vm10 = vcmp.eq.f32.partialorder %v488_v53, 8.507059e+37 }
 0x37f   :  { %vm486_vm9 = vmor %vm484_vm7, %vm485_vm6 }
 0x380   :  { %v481_v40 = vsub.f32 1.0, %v480_v26 }
 0x382   :  { %v482_v43 = vmul.f32 %v2152_v42, %v481_v40 }
 0x384   :  { %v483_v0 = vadd.f32 %v2152_v42, %v482_v43 }
 0x386   :  { %v487_v27 = vsel %vm486_vm9, %v2152_v42, %v483_v0 }
 0x387   :  { %v492_v56 = vsel %vm489_vm10, %v491_v20, %v487_v27 }
 0x3d5   :  { %v509_v52 = vpop.permute.xlu1 %508 }
 0x3d6   :  { %v511_v57 = vmul.f32 %v509_v52, %v492_v56 }
 0x3dc   :  { %v565_v19 = vpop.permute.xlu0 %564 }
 0x3dd   :  { %v567_v34 = vmul.f32 %v565_v19, %v548_v13 }
 0x3df   :  { %569 = vrot.lane.b32.xlu2 %v567_v34, %s2474_s8 }
 0x3e4   :  { %v628_v14 = vpop.permute.xlu0 %627 }
 0x3e5   :  { %v631_v60 = vmul.f32 %v628_v14, %v2546_v4  ;;  %v630_v53 = vmul.f32 %v628_v14, %v2556_v10 }
 0x3e7   :  { %v633_v13 = vadd.f32 %v631_v60, %v2548_v5  ;;  %v632_v27 = vadd.f32 %v630_v53, %v2558_v11 }
 0x439   :  { %v570_v59 = vpop.permute.xlu2 %569 }
 0x43a   :  { %v572_v61 = vsel %vm224_vm8, %v511_v57, %v570_v59 }
 0x43b   :  { %v573_v1 = vpack.c.bf16 %v572_v61, %v572_v61 }
 0x43d   :  { %582 = vmatmul.bf16.vlgmr.msrb.gmra.mxu0 %v573_v1  ;;  %595 = vmatmul.bf16.vlgmr.msrb.gmra.mxu1 %v573_v1 }
 0x43e   :  { %608 = vmatmul.bf16.vlgmr.msrb.gmra.mxu2 %v573_v1  ;;  %621 = vmatmul.bf16.vlgmr.msrb.gmra.mxu3 %v573_v1 }
 0x43f   :  { %938 = vmatpush.bf16.msrb.mxu0 %v2566_v32  ;;  %951 = vmatpush.bf16.msrb.mxu1 %v2568_v36 }
 0x440   :  { %964 = vmatpush.bf16.msrb.mxu2 %v2570_v37  ;;  %977 = vmatpush.bf16.msrb.mxu3 %v2573_v41 }
 0x443   :  { %939 = vmatpush.bf16.msrb.mxu0 %v2577_v45  ;;  %952 = vmatpush.bf16.msrb.mxu1 %v2579_v46 }
 0x444   :  { %965 = vmatpush.bf16.msrb.mxu2 %v2582_v50  ;;  %978 = vmatpush.bf16.msrb.mxu3 %v2584_v54 }
 0x447   :  { %940 = vmatpush.bf16.msrb.mxu0 %v2587_v58  ;;  %953 = vmatpush.bf16.msrb.mxu1 %v2591_v62 }
 0x448   :  { %966 = vmatpush.bf16.msrb.mxu2 %v2593_v63  ;;  %979 = vmatpush.bf16.msrb.mxu3 %v2596_v6 }
 0x44b   :  { %941 = vmatpush.bf16.msrb.mxu0 %v2599_v15  ;;  %954 = vmatpush.bf16.msrb.mxu1 %v2603_v16 }
 0x44c   :  { %967 = vmatpush.bf16.msrb.mxu2 %v2605_v17  ;;  %980 = vmatpush.bf16.msrb.mxu3 %v2608_v21 }
 0x44f   :  { %942 = vmatpush.bf16.msrb.mxu0 %v2611_v28  ;;  %955 = vmatpush.bf16.msrb.mxu1 %v2615_v29 }
 0x450   :  { %968 = vmatpush.bf16.msrb.mxu2 %v2617_v30  ;;  %981 = vmatpush.bf16.msrb.mxu3 %v2620_v35 }
 0x453   :  { %943 = vmatpush.bf16.msrb.mxu0 %v2624_v47  ;;  %956 = vmatpush.bf16.msrb.mxu1 %v2628_v48 }
 0x454   :  { %969 = vmatpush.bf16.msrb.mxu2 %v2630_v49  ;;  %982 = vmatpush.bf16.msrb.mxu3 %v2633_v55 }
 0x457   :  { %944 = vmatpush.bf16.msrb.mxu0 %v2638_v2  ;;  %957 = vmatpush.bf16.msrb.mxu1 %v2642_v3 }
 0x458   :  { %970 = vmatpush.bf16.msrb.mxu2 %v2644_v7  ;;  %983 = vmatpush.bf16.msrb.mxu3 %v2648_v9 }
 0x45b   :  { %945 = vmatpush.bf16.msrb.mxu0 %v2656_v23  ;;  %958 = vmatpush.bf16.msrb.mxu1 %v2658_v31 }
 0x45c   :  { %971 = vmatpush.bf16.msrb.mxu2 %v2660_v33  ;;  %984 = vmatpush.bf16.msrb.mxu3 %v2663_v8 }
 0x4ba   :  { %v583_v19 = vpop.f32.mrf.mxu0  ;;  %v596_v34 = vpop.f32.mrf.mxu1 }
 0x4bb   :  { %v2803_v22 = vadd.f32 %v633_v13, %v596_v34  ;;  %v634_v20 = vadd.f32 %v632_v27, %v583_v19 }
 0x4bd   :  { %2153 = vtanh.f32 %v2803_v22  ;;  %v1990_v52 = vmul.f32 -1.442695, %v634_v20 }
 0x4c1   :  { %v609_v38 = vpop.f32.mrf.mxu2  ;;  %v622_v25 = vpop.f32.mrf.mxu3 }
 0x4c2   :  { %v2807_v12 = vadd.f32 %v622_v25, %v2740_v24  ;;  %v585_v42 = vpop.f32.mrf.mxu0  ;;  %v598_v26 = vpop.f32.mrf.mxu1  ;;  %v636_v1 = vadd.f32 %v609_v38, %v2748_v51 }
 0x4c3   :  { %v2154_v40 = vpop.eup %2153 }
 0x4c4   :  { %2155 = vtanh.f32 %v2807_v12  ;;  %679 = vrot.lane.b32.xlu2 %v2154_v40, %s2474_s8  ;;  %v1992_v13 = vmul.f32 -1.442695, %v636_v1 }
 0x4c5   :  { %2157 = vpow2.f32 %v1990_v52 }
 0x4c9   :  { %v611_v43 = vpop.f32.mrf.mxu2  ;;  %v624_v0 = vpop.f32.mrf.mxu3 }
 0x4ca   :  { %v2156_v44 = vpop.eup %2155 }
 0x4cb   :  { %735 = vrot.lane.b32.xlu1 %v2156_v44, %s2474_s8  ;;  %v2158_v56 = vpop.eup %2157 }
 0x4cc   :  { %v644_v57 = vadd.f32 1.0, %v2158_v56 }
 0x4ce   :  { %2159 = vrcp.f32 %v644_v57  ;;  %v657_v42 = vand.u32 2147483648, %v644_v57  ;;  %vm651_vm12 = vweird.f32 %v644_v57  ;;  %v655_v14 = vand.u32 2147483647, %v644_v57 }
 0x4cf   :  { %2161 = vpow2.f32 %v1992_v13 }
 0x4d0   :  { %v658_v40 = vor.u32 1.1754944e-38, %v657_v42  ;;  %vm656_vm14 = vcmp.eq.f32.partialorder %v655_v14, 8.507059e+37 }
 0x4d4   :  { %v2160_v59 = vpop.eup %2159 }
 0x4d5   :  { %v647_v61 = vmul.f32 %v2160_v59, %v644_v57  ;;  %vm652_vm11 = vweird.f32 %v2160_v59  ;;  %v2162_v26 = vpop.eup %2161 }
 0x4d6   :  { %vm653_vm13 = vmor %vm651_vm12, %vm652_vm11  ;;  %v700_v43 = vadd.f32 1.0, %v2162_v26 }
 0x4d7   :  { %v648_v60 = vsub.f32 1.0, %v647_v61 }
 0x4d8   :  { %2163 = vrcp.f32 %v700_v43  ;;  %v713_v61 = vand.u32 2147483648, %v700_v43  ;;  %vm707_vm0 = vweird.f32 %v700_v43  ;;  %v711_v57 = vand.u32 2147483647, %v700_v43 }
 0x4d9   :  { %v649_v34 = vmul.f32 %v2160_v59, %v648_v60 }
 0x4da   :  { %v714_v1 = vor.u32 1.1754944e-38, %v713_v61  ;;  %vm712_vm2 = vcmp.eq.f32.partialorder %v711_v57, 8.507059e+37 }
 0x4db   :  { %v650_v25 = vadd.f32 %v2160_v59, %v649_v34 }
 0x4dd   :  { %v654_v19 = vsel %vm653_vm13, %v2160_v59, %v650_v25 }
 0x4de   :  { %v659_v44 = vsel %vm656_vm14, %v658_v40, %v654_v19  ;;  %v2164_v38 = vpop.eup %2163 }
 0x4df   :  { %v703_v27 = vmul.f32 %v2164_v38, %v700_v43  ;;  %vm708_vm15 = vweird.f32 %v2164_v38  ;;  %v677_v25 = vmul.f32 %v659_v44, %v2756_v39  ;;  %v1993_v39 = vmul.f32 -1.442695, %v2807_v12 }
 0x4e0   :  { %vm709_vm1 = vmor %vm707_vm0, %vm708_vm15 }
 0x4e1   :  { %v704_v20 = vsub.f32 1.0, %v703_v27 }
 0x4e3   :  { %v705_v52 = vmul.f32 %v2164_v38, %v704_v20 }
 0x4e5   :  { %v706_v56 = vadd.f32 %v2164_v38, %v705_v52 }
 0x4e7   :  { %v710_v59 = vsel %vm709_vm1, %v2164_v38, %v706_v56 }
 0x4e8   :  { %v715_v13 = vsel %vm712_vm2, %v714_v1, %v710_v59 }
 0x4e9   :  { %v733_v19 = vmul.f32 %v715_v13, %v2759_v18 }
 0x51e   :  { %v680_v0 = vpop.permute.xlu2 %679 }
 0x51f   :  { %v682_v53 = vmul.f32 %v680_v0, %v659_v44 }
 0x521   :  { %684 = vrot.lane.b32.xlu2 %v682_v53, %s2474_s8 }
 0x53d   :  { %v736_v60 = vpop.permute.xlu1 %735 }
 0x53e   :  { %v738_v34 = vmul.f32 %v736_v60, %v715_v13  ;;  %v1991_v13 = vmul.f32 -1.442695, %v2803_v22 }
 0x540   :  { %740 = vrot.lane.b32.xlu1 %v738_v34, %s2474_s8 }
 0x57b   :  { %v685_v42 = vpop.permute.xlu2 %684 }
 0x57c   :  { %v2818_v14 = vadd.f32 %v685_v42, %v677_v25  ;;  %v2477_v42 = vmov 3  }
 0x57d   :  { %2112 = vset.pattern.permute.xlu0 %v2477_v42 }
 0x57e   :  { %2165 = vtanh.f32 %v2818_v14 }
 0x584   :  { %v2166_v26 = vpop.eup %2165 }
 0x585   :  { %690 = vrot.lane.b32.xlu1 %v2166_v26, %s2474_s8  ;;  %v2830_v26 = vld [vmem:[#allocation2] sm:$0xff] }
 0x5b2   :  { %v741_v40 = vpop.permute.xlu1 %740 }
 0x5b3   :  { %v2823_v43 = vadd.f32 %v741_v40, %v733_v19 }
 0x5b5   :  { %2167 = vtanh.f32 %v2823_v43 }
 0x5b6   :  { %2169 = vpow2.f32 %v1993_v39 }
 0x5bb   :  { %v2168_v0 = vpop.eup %2167 }
 0x5bc   :  { %746 = vrot.lane.b32.xlu0 %v2168_v0, %s2474_s8  ;;  %v2170_v44 = vpop.eup %2169 }
 0x5bd   :  { %v701_v53 = vadd.f32 1.0, %v2170_v44 }
 0x5bf   :  { %2171 = vrcp.f32 %v701_v53  ;;  %v728_v18 = vand.u32 2147483648, %v701_v53  ;;  %vm722_vm4 = vweird.f32 %v701_v53  ;;  %v726_v61 = vand.u32 2147483647, %v701_v53 }
 0x5c0   :  { %2173 = vpow2.f32 %v1991_v13 }
 0x5c1   :  { %v729_v59 = vor.u32 1.1754944e-38, %v728_v18  ;;  %vm727_vm6 = vcmp.eq.f32.partialorder %v726_v61, 8.507059e+37 }
 0x5c4   :  { %809 = vperm.xlu0 %2112, %v2830_v26  }
 0x5c5   :  { %v2172_v38 = vpop.eup %2171 }
 0x5c6   :  { %v718_v27 = vmul.f32 %v2172_v38, %v701_v53  ;;  %vm723_vm3 = vweird.f32 %v2172_v38  ;;  %v2174_v34 = vpop.eup %2173 }
 0x5c7   :  { %vm724_vm5 = vmor %vm722_vm4, %vm723_vm3  ;;  %v645_v25 = vadd.f32 1.0, %v2174_v34 }
 0x5c8   :  { %v719_v20 = vsub.f32 1.0, %v718_v27 }
 0x5c9   :  { %2175 = vrcp.f32 %v645_v25  ;;  %v672_v53 = vand.u32 2147483648, %v645_v25  ;;  %vm666_vm9 = vweird.f32 %v645_v25 }
 0x5ca   :  { %v720_v52 = vmul.f32 %v2172_v38, %v719_v20 }
 0x5cb   :  { %v673_v27 = vor.u32 1.1754944e-38, %v672_v53 }
 0x5cc   :  { %v721_v56 = vadd.f32 %v2172_v38, %v720_v52 }
 0x5ce   :  { %v725_v57 = vsel %vm724_vm5, %v2172_v38, %v721_v56  ;;  %v670_v38 = vand.u32 2147483647, %v645_v25 }
 0x5cf   :  { %v730_v1 = vsel %vm727_vm6, %v729_v59, %v725_v57  ;;  %v2176_v19 = vpop.eup %2175 }
 0x5d0   :  { %v662_v40 = vmul.f32 %v2176_v19, %v645_v25  ;;  %vm667_vm7 = vweird.f32 %v2176_v19  ;;  %vm671_vm11 = vcmp.eq.f32.partialorder %v670_v38, 8.507059e+37 }
 0x5d1   :  { %vm668_vm10 = vmor %vm666_vm9, %vm667_vm7 }
 0x5d2   :  { %v663_v0 = vsub.f32 1.0, %v662_v40 }
 0x5d4   :  { %v664_v39 = vmul.f32 %v2176_v19, %v663_v0 }
 0x5d6   :  { %v665_v44 = vadd.f32 %v2176_v19, %v664_v39 }
 0x5d8   :  { %v669_v22 = vsel %vm668_vm10, %v2176_v19, %v665_v44 }
 0x5d9   :  { %v674_v52 = vsel %vm671_vm11, %v673_v27, %v669_v22 }
 0x5f7   :  { %v691_v20 = vpop.permute.xlu1 %690 }
 0x5f8   :  { %v693_v56 = vmul.f32 %v691_v20, %v674_v52 }
 0x62e   :  { %v747_v60 = vpop.permute.xlu0 %746 }
 0x62f   :  { %v749_v12 = vmul.f32 %v747_v60, %v730_v1 }
 0x631   :  { %751 = vrot.lane.b32.xlu2 %v749_v12, %s2474_s8 }
 0x636   :  { %v810_v59 = vpop.permute.xlu0 %809 }
 0x637   :  { %v813_v1 = vmul.f32 %v810_v59, %v2546_v4  ;;  %v812_v22 = vmul.f32 %v810_v59, %v2556_v10 }
 0x639   :  { %v815_v60 = vadd.f32 %v813_v1, %v2548_v5  ;;  %v814_v27 = vadd.f32 %v812_v22, %v2558_v11 }
 0x68b   :  { %v752_v18 = vpop.permute.xlu2 %751 }
 0x68c   :  { %v754_v61 = vsel %vm224_vm8, %v693_v56, %v752_v18 }
 0x68d   :  { %v755_v57 = vpack.c.bf16 %v754_v61, %v754_v61 }
 0x68f   :  { %764 = vmatmul.bf16.vlgmr.msra.gmra.mxu0 %v755_v57  ;;  %777 = vmatmul.bf16.vlgmr.msra.gmra.mxu1 %v755_v57 }
 0x690   :  { %790 = vmatmul.bf16.vlgmr.msra.gmra.mxu2 %v755_v57  ;;  %803 = vmatmul.bf16.vlgmr.msra.gmra.mxu3 %v755_v57 }
 0x691   :  { %1120 = vmatpush.bf16.msra.mxu0 %v2566_v32  ;;  %1133 = vmatpush.bf16.msra.mxu1 %v2568_v36 }
 0x692   :  { %1146 = vmatpush.bf16.msra.mxu2 %v2570_v37  ;;  %1159 = vmatpush.bf16.msra.mxu3 %v2573_v41 }
 0x695   :  { %1121 = vmatpush.bf16.msra.mxu0 %v2577_v45  ;;  %1134 = vmatpush.bf16.msra.mxu1 %v2579_v46 }
 0x696   :  { %1147 = vmatpush.bf16.msra.mxu2 %v2582_v50  ;;  %1160 = vmatpush.bf16.msra.mxu3 %v2584_v54 }
 0x699   :  { %1122 = vmatpush.bf16.msra.mxu0 %v2587_v58  ;;  %1135 = vmatpush.bf16.msra.mxu1 %v2591_v62 }
 0x69a   :  { %1148 = vmatpush.bf16.msra.mxu2 %v2593_v63  ;;  %1161 = vmatpush.bf16.msra.mxu3 %v2596_v6 }
 0x69d   :  { %1123 = vmatpush.bf16.msra.mxu0 %v2599_v15  ;;  %1136 = vmatpush.bf16.msra.mxu1 %v2603_v16 }
 0x69e   :  { %1149 = vmatpush.bf16.msra.mxu2 %v2605_v17  ;;  %1162 = vmatpush.bf16.msra.mxu3 %v2608_v21 }
 0x6a1   :  { %1124 = vmatpush.bf16.msra.mxu0 %v2611_v28  ;;  %1137 = vmatpush.bf16.msra.mxu1 %v2615_v29 }
 0x6a2   :  { %1150 = vmatpush.bf16.msra.mxu2 %v2617_v30  ;;  %1163 = vmatpush.bf16.msra.mxu3 %v2620_v35 }
 0x6a5   :  { %1125 = vmatpush.bf16.msra.mxu0 %v2624_v47  ;;  %1138 = vmatpush.bf16.msra.mxu1 %v2628_v48 }
 0x6a6   :  { %1151 = vmatpush.bf16.msra.mxu2 %v2630_v49  ;;  %1164 = vmatpush.bf16.msra.mxu3 %v2633_v55 }
 0x6a9   :  { %1126 = vmatpush.bf16.msra.mxu0 %v2638_v2  ;;  %1139 = vmatpush.bf16.msra.mxu1 %v2642_v3 }
 0x6aa   :  { %1152 = vmatpush.bf16.msra.mxu2 %v2644_v7  ;;  %1165 = vmatpush.bf16.msra.mxu3 %v2648_v9 }
 0x6ad   :  { %1127 = vmatpush.bf16.msra.mxu0 %v2656_v23  ;;  %1140 = vmatpush.bf16.msra.mxu1 %v2658_v31 }
 0x6ae   :  { %1153 = vmatpush.bf16.msra.mxu2 %v2660_v33  ;;  %1166 = vmatpush.bf16.msra.mxu3 %v2663_v8 }
 0x70c   :  { %v765_v12 = vpop.f32.mrf.mxu0  ;;  %v778_v13 = vpop.f32.mrf.mxu1 }
 0x70d   :  { %v2868_v34 = vadd.f32 %v815_v60, %v778_v13  ;;  %v816_v20 = vadd.f32 %v814_v27, %v765_v12 }
 0x70f   :  { %2177 = vtanh.f32 %v2868_v34  ;;  %v1994_v52 = vmul.f32 -1.442695, %v816_v20 }
 0x713   :  { %v791_v25 = vpop.f32.mrf.mxu2  ;;  %v804_v42 = vpop.f32.mrf.mxu3 }
 0x714   :  { %v2872_v19 = vadd.f32 %v804_v42, %v2740_v24  ;;  %v767_v40 = vpop.f32.mrf.mxu0  ;;  %v780_v0 = vpop.f32.mrf.mxu1  ;;  %v818_v1 = vadd.f32 %v791_v25, %v2748_v51 }
 0x715   :  { %v2178_v39 = vpop.eup %2177 }
 0x716   :  { %2179 = vtanh.f32 %v2872_v19  ;;  %861 = vrot.lane.b32.xlu2 %v2178_v39, %s2474_s8  ;;  %v1996_v13 = vmul.f32 -1.442695, %v818_v1 }
 0x717   :  { %2181 = vpow2.f32 %v1994_v52 }
 0x71b   :  { %v793_v44 = vpop.f32.mrf.mxu2  ;;  %v806_v53 = vpop.f32.mrf.mxu3 }
 0x71c   :  { %v2180_v38 = vpop.eup %2179 }
 0x71d   :  { %917 = vrot.lane.b32.xlu1 %v2180_v38, %s2474_s8  ;;  %v2182_v56 = vpop.eup %2181 }
 0x71e   :  { %v826_v18 = vadd.f32 1.0, %v2182_v56 }
 0x720   :  { %2183 = vrcp.f32 %v826_v18  ;;  %v839_v0 = vand.u32 2147483648, %v826_v18  ;;  %vm833_vm13 = vweird.f32 %v826_v18  ;;  %v837_v59 = vand.u32 2147483647, %v826_v18 }
 0x721   :  { %2185 = vpow2.f32 %v1996_v13 }
 0x722   :  { %v840_v44 = vor.u32 1.1754944e-38, %v839_v0  ;;  %vm838_vm15 = vcmp.eq.f32.partialorder %v837_v59, 8.507059e+37 }
 0x726   :  { %v2184_v61 = vpop.eup %2183 }
 0x727   :  { %v829_v57 = vmul.f32 %v2184_v61, %v826_v18  ;;  %vm834_vm12 = vweird.f32 %v2184_v61  ;;  %v2186_v39 = vpop.eup %2185 }
 0x728   :  { %vm835_vm14 = vmor %vm833_vm13, %vm834_vm12  ;;  %v882_v53 = vadd.f32 1.0, %v2186_v39 }
 0x729   :  { %v830_v60 = vsub.f32 1.0, %v829_v57 }
 0x72a   :  { %2187 = vrcp.f32 %v882_v53  ;;  %v895_v1 = vand.u32 2147483648, %v882_v53  ;;  %vm889_vm1 = vweird.f32 %v882_v53  ;;  %v893_v18 = vand.u32 2147483647, %v882_v53 }
 0x72b   :  { %v831_v42 = vmul.f32 %v2184_v61, %v830_v60 }
 0x72c   :  { %v896_v60 = vor.u32 1.1754944e-38, %v895_v1  ;;  %vm894_vm3 = vcmp.eq.f32.partialorder %v893_v18, 8.507059e+37 }
 0x72d   :  { %v832_v40 = vadd.f32 %v2184_v61, %v831_v42 }
 0x72f   :  { %v836_v12 = vsel %vm835_vm14, %v2184_v61, %v832_v40 }
 0x730   :  { %v841_v22 = vsel %vm838_vm15, %v840_v44, %v836_v12  ;;  %v2188_v25 = vpop.eup %2187 }
 0x731   :  { %v885_v20 = vmul.f32 %v2188_v25, %v882_v53  ;;  %vm890_vm0 = vweird.f32 %v2188_v25  ;;  %v859_v0 = vmul.f32 %v841_v22, %v2818_v14  ;;  %v1997_v14 = vmul.f32 -1.442695, %v2872_v19 }
 0x732   :  { %vm891_vm2 = vmor %vm889_vm1, %vm890_vm0 }
 0x733   :  { %v886_v52 = vsub.f32 1.0, %v885_v20 }
 0x735   :  { %v887_v56 = vmul.f32 %v2188_v25, %v886_v52 }
 0x737   :  { %v888_v57 = vadd.f32 %v2188_v25, %v887_v56 }
 0x739   :  { %v892_v61 = vsel %vm891_vm2, %v2188_v25, %v888_v57 }
 0x73a   :  { %v897_v42 = vsel %vm894_vm3, %v896_v60, %v892_v61 }
 0x73b   :  { %v915_v44 = vmul.f32 %v897_v42, %v2823_v43 }
 0x770   :  { %v862_v38 = vpop.permute.xlu2 %861 }
 0x771   :  { %v864_v27 = vmul.f32 %v862_v38, %v841_v22 }
 0x773   :  { %866 = vrot.lane.b32.xlu2 %v864_v27, %s2474_s8 }
 0x78f   :  { %v918_v13 = vpop.permute.xlu1 %917 }
 0x790   :  { %v920_v40 = vmul.f32 %v918_v13, %v897_v42 }
 0x792   :  { %922 = vrot.lane.b32.xlu1 %v920_v40, %s2474_s8  ;;  %v1995_v40 = vmul.f32 -1.442695, %v2868_v34 }
 0x7cd   :  { %v867_v59 = vpop.permute.xlu2 %866 }
 0x7ce   :  { %v2883_v39 = vadd.f32 %v867_v59, %v859_v0 }
 0x7d0   :  { %2189 = vtanh.f32 %v2883_v39 }
 0x7d6   :  { %v2190_v12 = vpop.eup %2189 }
 0x7d7   :  { %872 = vrot.lane.b32.xlu1 %v2190_v12, %s2474_s8  ;;  %v2478_v12 = vmov 4  }
 0x7d8   :  { %2113 = vset.pattern.permute.xlu0 %v2478_v12 }
 0x804   :  { %v923_v53 = vpop.permute.xlu1 %922 }
 0x805   :  { %v2888_v38 = vadd.f32 %v923_v53, %v915_v44 }
 0x807   :  { %2191 = vtanh.f32 %v2888_v38 }
 0x808   :  { %2193 = vpow2.f32 %v1997_v14 }
 0x80d   :  { %v2192_v27 = vpop.eup %2191 }
 0x80e   :  { %928 = vrot.lane.b32.xlu0 %v2192_v27, %s2474_s8  ;;  %v2194_v22 = vpop.eup %2193 }
 0x80f   :  { %v883_v25 = vadd.f32 1.0, %v2194_v22 }
 0x811   :  { %2195 = vrcp.f32 %v883_v25  ;;  %v910_v43 = vand.u32 2147483648, %v883_v25  ;;  %vm904_vm5 = vweird.f32 %v883_v25  ;;  %v908_v18 = vand.u32 2147483647, %v883_v25 }
 0x812   :  { %2197 = vpow2.f32 %v1995_v40 }
 0x813   :  { %v911_v60 = vor.u32 1.1754944e-38, %v910_v43  ;;  %vm909_vm7 = vcmp.eq.f32.partialorder %v908_v18, 8.507059e+37 }
 0x816   :  { %991 = vperm.xlu0 %2113, %v2830_v26  }
 0x817   :  { %v2196_v20 = vpop.eup %2195 }
 0x818   :  { %v900_v52 = vmul.f32 %v2196_v20, %v883_v25  ;;  %vm905_vm4 = vweird.f32 %v2196_v20  ;;  %v2198_v0 = vpop.eup %2197 }
 0x819   :  { %vm906_vm6 = vmor %vm904_vm5, %vm905_vm4  ;;  %v827_v59 = vadd.f32 1.0, %v2198_v0 }
 0x81a   :  { %v901_v56 = vsub.f32 1.0, %v900_v52 }
 0x81b   :  { %2199 = vrcp.f32 %v827_v59  ;;  %v854_v25 = vand.u32 2147483648, %v827_v59  ;;  %vm848_vm10 = vweird.f32 %v827_v59 }
 0x81c   :  { %v902_v57 = vmul.f32 %v2196_v20, %v901_v56 }
 0x81d   :  { %v855_v34 = vor.u32 1.1754944e-38, %v854_v25 }
 0x81e   :  { %v903_v1 = vadd.f32 %v2196_v20, %v902_v57 }
 0x820   :  { %v907_v61 = vsel %vm906_vm6, %v2196_v20, %v903_v1  ;;  %v852_v20 = vand.u32 2147483647, %v827_v59 }
 0x821   :  { %v912_v13 = vsel %vm909_vm7, %v911_v60, %v907_v61  ;;  %v2200_v44 = vpop.eup %2199 }
 0x822   :  { %v844_v53 = vmul.f32 %v2200_v44, %v827_v59  ;;  %vm849_vm9 = vweird.f32 %v2200_v44  ;;  %vm853_vm12 = vcmp.eq.f32.partialorder %v852_v20, 8.507059e+37 }
 0x823   :  { %vm850_vm11 = vmor %vm848_vm10, %vm849_vm9 }
 0x824   :  { %v845_v27 = vsub.f32 1.0, %v844_v53 }
 0x826   :  { %v846_v14 = vmul.f32 %v2200_v44, %v845_v27 }
 0x828   :  { %v847_v22 = vadd.f32 %v2200_v44, %v846_v14 }
 0x82a   :  { %v851_v52 = vsel %vm850_vm11, %v2200_v44, %v847_v22 }
 0x82b   :  { %v856_v57 = vsel %vm853_vm12, %v855_v34, %v851_v52 }
 0x849   :  { %v873_v56 = vpop.permute.xlu1 %872 }
 0x84a   :  { %v875_v1 = vmul.f32 %v873_v56, %v856_v57 }
 0x880   :  { %v929_v42 = vpop.permute.xlu0 %928 }
 0x881   :  { %v931_v19 = vmul.f32 %v929_v42, %v912_v13 }
 0x883   :  { %933 = vrot.lane.b32.xlu2 %v931_v19, %s2474_s8 }
 0x888   :  { %v992_v60 = vpop.permute.xlu0 %991 }
 0x889   :  { %v995_v13 = vmul.f32 %v992_v60, %v2546_v4  ;;  %v994_v52 = vmul.f32 %v992_v60, %v2556_v10 }
 0x88b   :  { %v997_v42 = vadd.f32 %v995_v13, %v2548_v5  ;;  %v996_v34 = vadd.f32 %v994_v52, %v2558_v11 }
 0x8dd   :  { %v934_v43 = vpop.permute.xlu2 %933 }
 0x8de   :  { %v936_v18 = vsel %vm224_vm8, %v875_v1, %v934_v43 }
 0x8df   :  { %v937_v61 = vpack.c.bf16 %v936_v18, %v936_v18 }
 0x8e1   :  { %946 = vmatmul.bf16.vlgmr.msrb.gmra.mxu0 %v937_v61  ;;  %959 = vmatmul.bf16.vlgmr.msrb.gmra.mxu1 %v937_v61 }
 0x8e2   :  { %972 = vmatmul.bf16.vlgmr.msrb.gmra.mxu2 %v937_v61  ;;  %985 = vmatmul.bf16.vlgmr.msrb.gmra.mxu3 %v937_v61 }
 0x8e3   :  { %1302 = vmatpush.bf16.msrb.mxu0 %v2566_v32  ;;  %1315 = vmatpush.bf16.msrb.mxu1 %v2568_v36 }
 0x8e4   :  { %1328 = vmatpush.bf16.msrb.mxu2 %v2570_v37  ;;  %1341 = vmatpush.bf16.msrb.mxu3 %v2573_v41 }
 0x8e7   :  { %1303 = vmatpush.bf16.msrb.mxu0 %v2577_v45  ;;  %1316 = vmatpush.bf16.msrb.mxu1 %v2579_v46 }
 0x8e8   :  { %1329 = vmatpush.bf16.msrb.mxu2 %v2582_v50  ;;  %1342 = vmatpush.bf16.msrb.mxu3 %v2584_v54 }
 0x8eb   :  { %1304 = vmatpush.bf16.msrb.mxu0 %v2587_v58  ;;  %1317 = vmatpush.bf16.msrb.mxu1 %v2591_v62 }
 0x8ec   :  { %1330 = vmatpush.bf16.msrb.mxu2 %v2593_v63  ;;  %1343 = vmatpush.bf16.msrb.mxu3 %v2596_v6 }
 0x8ef   :  { %1305 = vmatpush.bf16.msrb.mxu0 %v2599_v15  ;;  %1318 = vmatpush.bf16.msrb.mxu1 %v2603_v16 }
 0x8f0   :  { %1331 = vmatpush.bf16.msrb.mxu2 %v2605_v17  ;;  %1344 = vmatpush.bf16.msrb.mxu3 %v2608_v21 }
 0x8f3   :  { %1306 = vmatpush.bf16.msrb.mxu0 %v2611_v28  ;;  %1319 = vmatpush.bf16.msrb.mxu1 %v2615_v29 }
 0x8f4   :  { %1332 = vmatpush.bf16.msrb.mxu2 %v2617_v30  ;;  %1345 = vmatpush.bf16.msrb.mxu3 %v2620_v35 }
 0x8f7   :  { %1307 = vmatpush.bf16.msrb.mxu0 %v2624_v47  ;;  %1320 = vmatpush.bf16.msrb.mxu1 %v2628_v48 }
 0x8f8   :  { %1333 = vmatpush.bf16.msrb.mxu2 %v2630_v49  ;;  %1346 = vmatpush.bf16.msrb.mxu3 %v2633_v55 }
 0x8fb   :  { %1308 = vmatpush.bf16.msrb.mxu0 %v2638_v2  ;;  %1321 = vmatpush.bf16.msrb.mxu1 %v2642_v3 }
 0x8fc   :  { %1334 = vmatpush.bf16.msrb.mxu2 %v2644_v7  ;;  %1347 = vmatpush.bf16.msrb.mxu3 %v2648_v9 }
 0x8ff   :  { %1309 = vmatpush.bf16.msrb.mxu0 %v2656_v23  ;;  %1322 = vmatpush.bf16.msrb.mxu1 %v2658_v31 }
 0x900   :  { %1335 = vmatpush.bf16.msrb.mxu2 %v2660_v33  ;;  %1348 = vmatpush.bf16.msrb.mxu3 %v2663_v8 }
 0x95e   :  { %v947_v19 = vpop.f32.mrf.mxu0  ;;  %v960_v40 = vpop.f32.mrf.mxu1 }
 0x95f   :  { %v2931_v0 = vadd.f32 %v997_v42, %v960_v40  ;;  %v998_v56 = vadd.f32 %v996_v34, %v947_v19 }
 0x961   :  { %2201 = vtanh.f32 %v2931_v0  ;;  %v1998_v57 = vmul.f32 -1.442695, %v998_v56 }
 0x965   :  { %v973_v59 = vpop.f32.mrf.mxu2  ;;  %v986_v12 = vpop.f32.mrf.mxu3 }
 0x966   :  { %v2935_v44 = vadd.f32 %v986_v12, %v2740_v24  ;;  %v949_v53 = vpop.f32.mrf.mxu0  ;;  %v962_v27 = vpop.f32.mrf.mxu1  ;;  %v1000_v13 = vadd.f32 %v973_v59, %v2748_v51 }
 0x967   :  { %v2202_v14 = vpop.eup %2201 }
 0x968   :  { %2203 = vtanh.f32 %v2935_v44  ;;  %1043 = vrot.lane.b32.xlu2 %v2202_v14, %s2474_s8  ;;  %v2000_v40 = vmul.f32 -1.442695, %v1000_v13 }
 0x969   :  { %2205 = vpow2.f32 %v1998_v57 }
 0x96d   :  { %v975_v22 = vpop.f32.mrf.mxu2  ;;  %v988_v25 = vpop.f32.mrf.mxu3 }
 0x96e   :  { %v2204_v20 = vpop.eup %2203 }
 0x96f   :  { %1099 = vrot.lane.b32.xlu1 %v2204_v20, %s2474_s8  ;;  %v2206_v1 = vpop.eup %2205 }
 0x970   :  { %v1008_v43 = vadd.f32 1.0, %v2206_v1 }
 0x972   :  { %2207 = vrcp.f32 %v1008_v43  ;;  %v1021_v27 = vand.u32 2147483648, %v1008_v43  ;;  %vm1015_vm14 = vweird.f32 %v1008_v43  ;;  %v1019_v60 = vand.u32 2147483647, %v1008_v43 }
 0x973   :  { %2209 = vpow2.f32 %v2000_v40 }
 0x974   :  { %v1022_v22 = vor.u32 1.1754944e-38, %v1021_v27  ;;  %vm1020_vm0 = vcmp.eq.f32.partialorder %v1019_v60, 8.507059e+37 }
 0x978   :  { %v2208_v18 = vpop.eup %2207 }
 0x979   :  { %v1011_v61 = vmul.f32 %v2208_v18, %v1008_v43  ;;  %vm1016_vm13 = vweird.f32 %v2208_v18  ;;  %v2210_v14 = vpop.eup %2209 }
 0x97a   :  { %vm1017_vm15 = vmor %vm1015_vm14, %vm1016_vm13  ;;  %v1064_v25 = vadd.f32 1.0, %v2210_v14 }
 0x97b   :  { %v1012_v42 = vsub.f32 1.0, %v1011_v61 }
 0x97c   :  { %2211 = vrcp.f32 %v1064_v25  ;;  %v1077_v13 = vand.u32 2147483648, %v1064_v25  ;;  %vm1071_vm2 = vweird.f32 %v1064_v25  ;;  %v1075_v43 = vand.u32 2147483647, %v1064_v25 }
 0x97d   :  { %v1013_v12 = vmul.f32 %v2208_v18, %v1012_v42 }
 0x97e   :  { %v1078_v42 = vor.u32 1.1754944e-38, %v1077_v13  ;;  %vm1076_vm4 = vcmp.eq.f32.partialorder %v1075_v43, 8.507059e+37 }
 0x97f   :  { %v1014_v53 = vadd.f32 %v2208_v18, %v1013_v12 }
 0x981   :  { %v1018_v19 = vsel %vm1017_vm15, %v2208_v18, %v1014_v53 }
 0x982   :  { %v1023_v52 = vsel %vm1020_vm0, %v1022_v22, %v1018_v19  ;;  %v2212_v59 = vpop.eup %2211 }
 0x983   :  { %v1067_v56 = vmul.f32 %v2212_v59, %v1064_v25  ;;  %vm1072_vm1 = vweird.f32 %v2212_v59  ;;  %v1041_v27 = vmul.f32 %v1023_v52, %v2883_v39  ;;  %v2001_v39 = vmul.f32 -1.442695, %v2935_v44 }
 0x984   :  { %vm1073_vm3 = vmor %vm1071_vm2, %vm1072_vm1 }
 0x985   :  { %v1068_v57 = vsub.f32 1.0, %v1067_v56 }
 0x987   :  { %v1069_v1 = vmul.f32 %v2212_v59, %v1068_v57 }
 0x989   :  { %v1070_v61 = vadd.f32 %v2212_v59, %v1069_v1 }
 0x98b   :  { %v1074_v18 = vsel %vm1073_vm3, %v2212_v59, %v1070_v61 }
 0x98c   :  { %v1079_v12 = vsel %vm1076_vm4, %v1078_v42, %v1074_v18 }
 0x98d   :  { %v1097_v22 = vmul.f32 %v1079_v12, %v2888_v38 }
 0x9c2   :  { %v1044_v20 = vpop.permute.xlu2 %1043 }
 0x9c3   :  { %v1046_v34 = vmul.f32 %v1044_v20, %v1023_v52 }
 0x9c5   :  { %1048 = vrot.lane.b32.xlu2 %v1046_v34, %s2474_s8 }
 0x9e1   :  { %v1100_v40 = vpop.permute.xlu1 %1099 }
 0x9e2   :  { %v1102_v53 = vmul.f32 %v1100_v40, %v1079_v12 }
 0x9e4   :  { %1104 = vrot.lane.b32.xlu1 %v1102_v53, %s2474_s8  ;;  %v1999_v53 = vmul.f32 -1.442695, %v2931_v0 }
 0xa1f   :  { %v1049_v60 = vpop.permute.xlu2 %1048 }
 0xa20   :  { %v2946_v14 = vadd.f32 %v1049_v60, %v1041_v27 }
 0xa22   :  { %2213 = vtanh.f32 %v2946_v14 }
 0xa28   :  { %v2214_v19 = vpop.eup %2213 }
 0xa29   :  { %1054 = vrot.lane.b32.xlu1 %v2214_v19, %s2474_s8  ;;  %v2479_v19 = vmov 5  }
 0xa2a   :  { %2114 = vset.pattern.permute.xlu0 %v2479_v19 }
 0xa56   :  { %v1105_v25 = vpop.permute.xlu1 %1104 }
 0xa57   :  { %v2951_v20 = vadd.f32 %v1105_v25, %v1097_v22 }
 0xa59   :  { %2215 = vtanh.f32 %v2951_v20 }
 0xa5a   :  { %2217 = vpow2.f32 %v2001_v39 }
 0xa5f   :  { %v2216_v34 = vpop.eup %2215 }
 0xa60   :  { %1110 = vrot.lane.b32.xlu0 %v2216_v34, %s2474_s8  ;;  %v2218_v52 = vpop.eup %2217 }
 0xa61   :  { %v1065_v59 = vadd.f32 1.0, %v2218_v52 }
 0xa63   :  { %2219 = vrcp.f32 %v1065_v59  ;;  %v1092_v38 = vand.u32 2147483648, %v1065_v59  ;;  %vm1086_vm6 = vweird.f32 %v1065_v59  ;;  %v1090_v43 = vand.u32 2147483647, %v1065_v59 }
 0xa64   :  { %2221 = vpow2.f32 %v1999_v53 }
 0xa65   :  { %v1093_v42 = vor.u32 1.1754944e-38, %v1092_v38  ;;  %vm1091_vm9 = vcmp.eq.f32.partialorder %v1090_v43, 8.507059e+37 }
 0xa68   :  { %1173 = vperm.xlu0 %2114, %v2830_v26  }
 0xa69   :  { %v2220_v56 = vpop.eup %2219 }
 0xa6a   :  { %v1082_v57 = vmul.f32 %v2220_v56, %v1065_v59  ;;  %vm1087_vm5 = vweird.f32 %v2220_v56  ;;  %v2222_v27 = vpop.eup %2221 }
 0xa6b   :  { %vm1088_vm7 = vmor %vm1086_vm6, %vm1087_vm5  ;;  %v1009_v60 = vadd.f32 1.0, %v2222_v27 }
 0xa6c   :  { %v1083_v1 = vsub.f32 1.0, %v1082_v57 }
 0xa6d   :  { %2223 = vrcp.f32 %v1009_v60  ;;  %v1036_v59 = vand.u32 2147483648, %v1009_v60  ;;  %vm1030_vm11 = vweird.f32 %v1009_v60 }
 0xa6e   :  { %v1084_v61 = vmul.f32 %v2220_v56, %v1083_v1 }
 0xa6f   :  { %v1037_v0 = vor.u32 1.1754944e-38, %v1036_v59 }
 0xa70   :  { %v1085_v13 = vadd.f32 %v2220_v56, %v1084_v61 }
 0xa72   :  { %v1089_v18 = vsel %vm1088_vm7, %v2220_v56, %v1085_v13  ;;  %v1034_v56 = vand.u32 2147483647, %v1009_v60 }
 0xa73   :  { %v1094_v40 = vsel %vm1091_vm9, %v1093_v42, %v1089_v18  ;;  %v2224_v22 = vpop.eup %2223 }
 0xa74   :  { %v1026_v25 = vmul.f32 %v2224_v22, %v1009_v60  ;;  %vm1031_vm10 = vweird.f32 %v2224_v22  ;;  %vm1035_vm13 = vcmp.eq.f32.partialorder %v1034_v56, 8.507059e+37 }
 0xa75   :  { %vm1032_vm12 = vmor %vm1030_vm11, %vm1031_vm10 }
 0xa76   :  { %v1027_v34 = vsub.f32 1.0, %v1026_v25 }
 0xa78   :  { %v1028_v39 = vmul.f32 %v2224_v22, %v1027_v34 }
 0xa7a   :  { %v1029_v52 = vadd.f32 %v2224_v22, %v1028_v39 }
 0xa7c   :  { %v1033_v57 = vsel %vm1032_vm12, %v2224_v22, %v1029_v52 }
 0xa7d   :  { %v1038_v61 = vsel %vm1035_vm13, %v1037_v0, %v1033_v57 }
 0xa9b   :  { %v1055_v1 = vpop.permute.xlu1 %1054 }
 0xa9c   :  { %v1057_v13 = vmul.f32 %v1055_v1, %v1038_v61 }
 0xad2   :  { %v1111_v12 = vpop.permute.xlu0 %1110 }
 0xad3   :  { %v1113_v44 = vmul.f32 %v1111_v12, %v1094_v40 }
 0xad5   :  { %1115 = vrot.lane.b32.xlu2 %v1113_v44, %s2474_s8 }
 0xb2f   :  { %v1116_v38 = vpop.permute.xlu2 %1115 }
 0xb30   :  { %v1118_v43 = vsel %vm224_vm8, %v1057_v13, %v1116_v38 }
 0xb31   :  { %v1119_v18 = vpack.c.bf16 %v1118_v43, %v1118_v43 }
 0xb33   :  { %1128 = vmatmul.bf16.vlgmr.msra.gmra.mxu0 %v1119_v18  ;;  %1141 = vmatmul.bf16.vlgmr.msra.gmra.mxu1 %v1119_v18 }
 0xb34   :  { %1154 = vmatmul.bf16.vlgmr.msra.gmra.mxu2 %v1119_v18  ;;  %1167 = vmatmul.bf16.vlgmr.msra.gmra.mxu3 %v1119_v18 }
 0xb35   :  { %1484 = vmatpush.bf16.msra.mxu0 %v2566_v32  ;;  %1497 = vmatpush.bf16.msra.mxu1 %v2568_v36  ;;  %v1174_v32 = vpop.permute.xlu0 %1173 }
 0xb36   :  { %1510 = vmatpush.bf16.msra.mxu2 %v2570_v37  ;;  %1523 = vmatpush.bf16.msra.mxu3 %v2573_v41  ;;  %v1177_v36 = vmul.f32 %v1174_v32, %v2546_v4 }
 0xb39   :  { %1485 = vmatpush.bf16.msra.mxu0 %v2577_v45  ;;  %1498 = vmatpush.bf16.msra.mxu1 %v2579_v46  ;;  %v1179_v45 = vadd.f32 %v1177_v36, %v2548_v5 }
 0xb3a   :  { %1511 = vmatpush.bf16.msra.mxu2 %v2582_v50  ;;  %1524 = vmatpush.bf16.msra.mxu3 %v2584_v54 }
 0xb3d   :  { %1486 = vmatpush.bf16.msra.mxu0 %v2587_v58  ;;  %1499 = vmatpush.bf16.msra.mxu1 %v2591_v62 }
 0xb3e   :  { %1512 = vmatpush.bf16.msra.mxu2 %v2593_v63  ;;  %1525 = vmatpush.bf16.msra.mxu3 %v2596_v6 }
 0xb41   :  { %1487 = vmatpush.bf16.msra.mxu0 %v2599_v15  ;;  %1500 = vmatpush.bf16.msra.mxu1 %v2603_v16 }
 0xb42   :  { %1513 = vmatpush.bf16.msra.mxu2 %v2605_v17  ;;  %1526 = vmatpush.bf16.msra.mxu3 %v2608_v21 }
 0xb45   :  { %1488 = vmatpush.bf16.msra.mxu0 %v2611_v28  ;;  %1501 = vmatpush.bf16.msra.mxu1 %v2615_v29 }
 0xb46   :  { %1514 = vmatpush.bf16.msra.mxu2 %v2617_v30  ;;  %1527 = vmatpush.bf16.msra.mxu3 %v2620_v35 }
 0xb49   :  { %1489 = vmatpush.bf16.msra.mxu0 %v2624_v47  ;;  %1502 = vmatpush.bf16.msra.mxu1 %v2628_v48 }
 0xb4a   :  { %1515 = vmatpush.bf16.msra.mxu2 %v2630_v49  ;;  %1528 = vmatpush.bf16.msra.mxu3 %v2633_v55 }
 0xb4d   :  { %1490 = vmatpush.bf16.msra.mxu0 %v2638_v2  ;;  %1503 = vmatpush.bf16.msra.mxu1 %v2642_v3 }
 0xb4e   :  { %1516 = vmatpush.bf16.msra.mxu2 %v2644_v7  ;;  %1529 = vmatpush.bf16.msra.mxu3 %v2648_v9 }
 0xb51   :  { %1491 = vmatpush.bf16.msra.mxu0 %v2656_v23  ;;  %1504 = vmatpush.bf16.msra.mxu1 %v2658_v31  ;;  %v1176_v31 = vmul.f32 %v1174_v32, %v2556_v10 }
 0xb52   :  { %1517 = vmatpush.bf16.msra.mxu2 %v2660_v33  ;;  %1530 = vmatpush.bf16.msra.mxu3 %v2663_v8 }
 0xb53   :  { %v1178_v42 = vadd.f32 %v1176_v31, %v2558_v11 }
 0xbb0   :  { %v1129_v46 = vpop.f32.mrf.mxu0  ;;  %v1142_v58 = vpop.f32.mrf.mxu1 }
 0xbb1   :  { %v2994_v62 = vadd.f32 %v1179_v45, %v1142_v58  ;;  %v1180_v40 = vadd.f32 %v1178_v42, %v1129_v46 }
 0xbb3   :  { %2225 = vtanh.f32 %v2994_v62  ;;  %v2002_v12 = vmul.f32 -1.442695, %v1180_v40 }
 0xbb7   :  { %v1155_v15 = vpop.f32.mrf.mxu2  ;;  %v1168_v16 = vpop.f32.mrf.mxu3 }
 0xbb8   :  { %v2998_v28 = vadd.f32 %v1168_v16, %v2740_v24  ;;  %v1131_v29 = vpop.f32.mrf.mxu0  ;;  %v1144_v47 = vpop.f32.mrf.mxu1  ;;  %v1182_v19 = vadd.f32 %v1155_v15, %v2748_v51 }
 0xbb9   :  { %v2226_v48 = vpop.eup %2225 }
 0xbba   :  { %2227 = vtanh.f32 %v2998_v28  ;;  %1225 = vrot.lane.b32.xlu2 %v2226_v48, %s2474_s8  ;;  %v2004_v25 = vmul.f32 -1.442695, %v1182_v19 }
 0xbbb   :  { %2229 = vpow2.f32 %v2002_v12 }
 0xbbf   :  { %v1157_v2 = vpop.f32.mrf.mxu2  ;;  %v1170_v3 = vpop.f32.mrf.mxu3 }
 0xbc0   :  { %v2228_v23 = vpop.eup %2227 }
 0xbc1   :  { %1281 = vrot.lane.b32.xlu1 %v2228_v23, %s2474_s8  ;;  %v2230_v44 = vpop.eup %2229 }
 0xbc2   :  { %v1190_v53 = vadd.f32 1.0, %v2230_v44 }
 0xbc4   :  { %2231 = vrcp.f32 %v1190_v53  ;;  %v1203_v52 = vand.u32 2147483648, %v1190_v53  ;;  %vm1197_vm15 = vweird.f32 %v1190_v53  ;;  %v1201_v59 = vand.u32 2147483647, %v1190_v53 }
 0xbc5   :  { %2233 = vpow2.f32 %v2004_v25 }
 0xbc6   :  { %v1204_v0 = vor.u32 1.1754944e-38, %v1203_v52  ;;  %vm1202_vm1 = vcmp.eq.f32.partialorder %v1201_v59, 8.507059e+37 }
 0xbca   :  { %v2232_v27 = vpop.eup %2231 }
 0xbcb   :  { %v1193_v60 = vmul.f32 %v2232_v27, %v1190_v53  ;;  %vm1198_vm14 = vweird.f32 %v2232_v27  ;;  %v2234_v56 = vpop.eup %2233 }
 0xbcc   :  { %vm1199_vm0 = vmor %vm1197_vm15, %vm1198_vm14  ;;  %v1246_v1 = vadd.f32 1.0, %v2234_v56 }
 0xbcd   :  { %v1194_v22 = vsub.f32 1.0, %v1193_v60 }
 0xbce   :  { %2235 = vrcp.f32 %v1246_v1  ;;  %v1259_v46 = vand.u32 2147483648, %v1246_v1  ;;  %vm1253_vm3 = vweird.f32 %v1246_v1  ;;  %v1257_v58 = vand.u32 2147483647, %v1246_v1 }
 0xbcf   :  { %v1195_v34 = vmul.f32 %v2232_v27, %v1194_v22 }
 0xbd0   :  { %v1260_v16 = vor.u32 1.1754944e-38, %v1259_v46  ;;  %vm1258_vm5 = vcmp.eq.f32.partialorder %v1257_v58, 8.507059e+37 }
 0xbd1   :  { %v1196_v39 = vadd.f32 %v2232_v27, %v1195_v34 }
 0xbd3   :  { %v1200_v57 = vsel %vm1199_vm0, %v2232_v27, %v1196_v39 }
 0xbd4   :  { %v1205_v13 = vsel %vm1202_vm1, %v1204_v0, %v1200_v57  ;;  %v2236_v43 = vpop.eup %2235  ;;  %v2003_v0 = vmul.f32 -1.442695, %v2994_v62 }
 0xbd5   :  { %v1249_v18 = vmul.f32 %v2236_v43, %v1246_v1  ;;  %vm1254_vm2 = vweird.f32 %v2236_v43  ;;  %v1223_v2 = vmul.f32 %v1205_v13, %v2946_v14  ;;  %v2005_v14 = vmul.f32 -1.442695, %v2998_v28 }
 0xbd6   :  { %vm1255_vm4 = vmor %vm1253_vm3, %vm1254_vm2 }
 0xbd7   :  { %v1250_v32 = vsub.f32 1.0, %v1249_v18 }
 0xbd9   :  { %v1251_v36 = vmul.f32 %v2236_v43, %v1250_v32 }
 0xbdb   :  { %v1252_v45 = vadd.f32 %v2236_v43, %v1251_v36 }
 0xbdd   :  { %v1256_v15 = vsel %vm1255_vm4, %v2236_v43, %v1252_v45 }
 0xbde   :  { %v1261_v47 = vsel %vm1258_vm5, %v1260_v16, %v1256_v15 }
 0xbdf   :  { %v1279_v42 = vmul.f32 %v1261_v47, %v2951_v20 }
 0xc14   :  { %v1226_v61 = vpop.permute.xlu2 %1225 }
 0xc15   :  { %v1228_v38 = vmul.f32 %v1226_v61, %v1205_v13  ;;  %v2480_v13 = vmov 6  }
 0xc16   :  { %2115 = vset.pattern.permute.xlu0 %v2480_v13 }
 0xc17   :  { %1230 = vrot.lane.b32.xlu2 %v1228_v38, %s2474_s8 }
 0xc33   :  { %v1282_v29 = vpop.permute.xlu1 %1281 }
 0xc34   :  { %v1284_v48 = vmul.f32 %v1282_v29, %v1261_v47 }
 0xc36   :  { %1286 = vrot.lane.b32.xlu1 %v1284_v48, %s2474_s8 }
 0xc71   :  { %v1231_v3 = vpop.permute.xlu2 %1230 }
 0xc72   :  { %v3009_v23 = vadd.f32 %v1231_v3, %v1223_v2 }
 0xc74   :  { %2237 = vtanh.f32 %v3009_v23 }
 0xc7a   :  { %v2238_v31 = vpop.eup %2237 }
 0xc7b   :  { %1236 = vrot.lane.b32.xlu1 %v2238_v31, %s2474_s8 }
 0xca8   :  { %v1287_v40 = vpop.permute.xlu1 %1286 }
 0xca9   :  { %v3014_v12 = vadd.f32 %v1287_v40, %v1279_v42 }
 0xcab   :  { %2239 = vtanh.f32 %v3014_v12 }
 0xcac   :  { %2241 = vpow2.f32 %v2005_v14 }
 0xcb1   :  { %v2240_v44 = vpop.eup %2239 }
 0xcb2   :  { %1292 = vrot.lane.b32.xlu0 %v2240_v44, %s2474_s8  ;;  %v2242_v53 = vpop.eup %2241 }
 0xcb3   :  { %v1247_v27 = vadd.f32 1.0, %v2242_v53 }
 0xcb5   :  { %2243 = vrcp.f32 %v1247_v27  ;;  %v1274_v20 = vand.u32 2147483648, %v1247_v27  ;;  %vm1268_vm7 = vweird.f32 %v1247_v27  ;;  %v1272_v39 = vand.u32 2147483647, %v1247_v27 }
 0xcb6   :  { %2245 = vpow2.f32 %v2003_v0 }
 0xcb7   :  { %v1275_v59 = vor.u32 1.1754944e-38, %v1274_v20  ;;  %vm1273_vm10 = vcmp.eq.f32.partialorder %v1272_v39, 8.507059e+37 }
 0xcba   :  { %1355 = vperm.xlu0 %2115, %v2830_v26  }
 0xcbb   :  { %v2244_v60 = vpop.eup %2243 }
 0xcbc   :  { %v1264_v19 = vmul.f32 %v2244_v60, %v1247_v27  ;;  %vm1269_vm6 = vweird.f32 %v2244_v60  ;;  %v2246_v1 = vpop.eup %2245 }
 0xcbd   :  { %vm1270_vm9 = vmor %vm1268_vm7, %vm1269_vm6  ;;  %v1191_v61 = vadd.f32 1.0, %v2246_v1 }
 0xcbe   :  { %v1265_v22 = vsub.f32 1.0, %v1264_v19 }
 0xcbf   :  { %2247 = vrcp.f32 %v1191_v61  ;;  %v1218_v45 = vand.u32 2147483648, %v1191_v61  ;;  %vm1212_vm12 = vweird.f32 %v1191_v61  ;;  %v1216_v46 = vand.u32 2147483647, %v1191_v61 }
 0xcc0   :  { %v1266_v25 = vmul.f32 %v2244_v60, %v1265_v22 }
 0xcc1   :  { %v1219_v62 = vor.u32 1.1754944e-38, %v1218_v45  ;;  %vm1217_vm14 = vcmp.eq.f32.partialorder %v1216_v46, 8.507059e+37 }
 0xcc2   :  { %v1267_v34 = vadd.f32 %v2244_v60, %v1266_v25 }
 0xcc4   :  { %v1271_v52 = vsel %vm1270_vm9, %v2244_v60, %v1267_v34 }
 0xcc5   :  { %v1276_v56 = vsel %vm1273_vm10, %v1275_v59, %v1271_v52  ;;  %v2248_v38 = vpop.eup %2247 }
 0xcc6   :  { %v1208_v43 = vmul.f32 %v2248_v38, %v1191_v61  ;;  %vm1213_vm11 = vweird.f32 %v2248_v38 }
 0xcc7   :  { %vm1214_vm13 = vmor %vm1212_vm12, %vm1213_vm11 }
 0xcc8   :  { %v1209_v18 = vsub.f32 1.0, %v1208_v43 }
 0xcca   :  { %v1210_v32 = vmul.f32 %v2248_v38, %v1209_v18 }
 0xccc   :  { %v1211_v36 = vadd.f32 %v2248_v38, %v1210_v32 }
 0xcce   :  { %v1215_v58 = vsel %vm1214_vm13, %v2248_v38, %v1211_v36 }
 0xccf   :  { %v1220_v16 = vsel %vm1217_vm14, %v1219_v62, %v1215_v58 }
 0xced   :  { %v1237_v15 = vpop.permute.xlu1 %1236 }
 0xcee   :  { %v1239_v29 = vmul.f32 %v1237_v15, %v1220_v16 }
 0xd24   :  { %v1293_v57 = vpop.permute.xlu0 %1292 }
 0xd25   :  { %v1295_v28 = vmul.f32 %v1293_v57, %v1276_v56 }
 0xd27   :  { %1297 = vrot.lane.b32.xlu2 %v1295_v28, %s2474_s8 }
 0xd81   :  { %v1298_v47 = vpop.permute.xlu2 %1297 }
 0xd82   :  { %v1300_v48 = vsel %vm224_vm8, %v1239_v29, %v1298_v47 }
 0xd83   :  { %v1301_v26 = vpack.c.bf16 %v1300_v48, %v1300_v48 }
 0xd85   :  { %1310 = vmatmul.bf16.vlgmr.msrb.gmra.mxu0 %v1301_v26  ;;  %1323 = vmatmul.bf16.vlgmr.msrb.gmra.mxu1 %v1301_v26 }
 0xd86   :  { %1336 = vmatmul.bf16.vlgmr.msrb.gmra.mxu2 %v1301_v26  ;;  %1349 = vmatmul.bf16.vlgmr.msrb.gmra.mxu3 %v1301_v26 }
 0xd87   :  { %1666 = vmatpush.bf16.msrb.mxu0 %v2570_v37  ;;  %1679 = vmatpush.bf16.msrb.mxu1 %v2573_v41  ;;  %v1356_v37 = vpop.permute.xlu0 %1355 }
 0xd88   :  { %v1359_v41 = vmul.f32 %v1356_v37, %v2546_v4 }
 0xd8b   :  { %1667 = vmatpush.bf16.msrb.mxu0 %v2582_v50  ;;  %1680 = vmatpush.bf16.msrb.mxu1 %v2584_v54  ;;  %v1361_v50 = vadd.f32 %v1359_v41, %v2548_v5 }
 0xd8f   :  { %1668 = vmatpush.bf16.msrb.mxu0 %v2593_v63  ;;  %1681 = vmatpush.bf16.msrb.mxu1 %v2596_v6 }
 0xd93   :  { %1669 = vmatpush.bf16.msrb.mxu0 %v2605_v17  ;;  %1682 = vmatpush.bf16.msrb.mxu1 %v2608_v21 }
 0xd97   :  { %1670 = vmatpush.bf16.msrb.mxu0 %v2617_v30  ;;  %1683 = vmatpush.bf16.msrb.mxu1 %v2620_v35 }
 0xd9b   :  { %1671 = vmatpush.bf16.msrb.mxu0 %v2630_v49  ;;  %1684 = vmatpush.bf16.msrb.mxu1 %v2633_v55 }
 0xd9f   :  { %1672 = vmatpush.bf16.msrb.mxu0 %v2644_v7  ;;  %1685 = vmatpush.bf16.msrb.mxu1 %v2648_v9 }
 0xda3   :  { %1673 = vmatpush.bf16.msrb.mxu0 %v2660_v33  ;;  %1686 = vmatpush.bf16.msrb.mxu1 %v2663_v8  ;;  %v1358_v8 = vmul.f32 %v1356_v37, %v2556_v10 }
 0xda5   :  { %v1360_v2 = vadd.f32 %v1358_v8, %v2558_v11 }
 0xe02   :  { %v1311_v54 = vpop.f32.mrf.mxu0  ;;  %v1324_v63 = vpop.f32.mrf.mxu1 }
 0xe03   :  { %v3041_v6 = vadd.f32 %v1361_v50, %v1324_v63  ;;  %v1362_v3 = vadd.f32 %v1360_v2, %v1311_v54 }
 0xe05   :  { %2249 = vtanh.f32 %v3041_v6  ;;  %v2006_v31 = vmul.f32 -1.442695, %v1362_v3  ;;  %v2007_v8 = vmul.f32 -1.442695, %v3041_v6 }
 0xe09   :  { %v1337_v17 = vpop.f32.mrf.mxu2  ;;  %v1350_v21 = vpop.f32.mrf.mxu3 }
 0xe0a   :  { %v3045_v30 = vadd.f32 %v1350_v21, %v2740_v24  ;;  %v1313_v35 = vpop.f32.mrf.mxu0  ;;  %v1326_v49 = vpop.f32.mrf.mxu1  ;;  %v1364_v53 = vadd.f32 %v1337_v17, %v2748_v51 }
 0xe0b   :  { %v2250_v55 = vpop.eup %2249 }
 0xe0c   :  { %2251 = vtanh.f32 %v3045_v30  ;;  %1407 = vrot.lane.b32.xlu2 %v2250_v55, %s2474_s8  ;;  %v2008_v60 = vmul.f32 -1.442695, %v1364_v53 }
 0xe0d   :  { %2253 = vpow2.f32 %v2006_v31  ;;  %v2481_v31 = vmov 7  }
 0xe0e   :  { %2116 = vset.pattern.permute.xlu0 %v2481_v31 }
 0xe11   :  { %v1339_v7 = vpop.f32.mrf.mxu2  ;;  %v1352_v9 = vpop.f32.mrf.mxu3 }
 0xe12   :  { %v2252_v33 = vpop.eup %2251 }
 0xe13   :  { %1463 = vrot.lane.b32.xlu1 %v2252_v33, %s2474_s8  ;;  %v2254_v42 = vpop.eup %2253 }
 0xe14   :  { %v1372_v40 = vadd.f32 1.0, %v2254_v42  ;;  %v2310_v42 = vld [vmem:[#allocation2] sm:$0xff] }
 0xe16   :  { %2255 = vrcp.f32 %v1372_v40  ;;  %v1385_v25 = vand.u32 2147483648, %v1372_v40  ;;  %vm1379_vm0 = vweird.f32 %v1372_v40  ;;  %v1383_v34 = vand.u32 2147483647, %v1372_v40 }
 0xe17   :  { %2257 = vpow2.f32 %v2008_v60 }
 0xe18   :  { %v1386_v52 = vor.u32 1.1754944e-38, %v1385_v25  ;;  %vm1384_vm2 = vcmp.eq.f32.partialorder %v1383_v34, 8.507059e+37 }
 0xe1c   :  { %v2256_v44 = vpop.eup %2255 }
 0xe1d   :  { %v1375_v14 = vmul.f32 %v2256_v44, %v1372_v40  ;;  %vm1380_vm15 = vweird.f32 %v2256_v44  ;;  %v2258_v20 = vpop.eup %2257 }
 0xe1e   :  { %vm1381_vm1 = vmor %vm1379_vm0, %vm1380_vm15  ;;  %v1428_v59 = vadd.f32 1.0, %v2258_v20 }
 0xe1f   :  { %v1376_v27 = vsub.f32 1.0, %v1375_v14 }
 0xe20   :  { %2259 = vrcp.f32 %v1428_v59  ;;  %v1441_v43 = vand.u32 2147483648, %v1428_v59  ;;  %vm1435_vm4 = vweird.f32 %v1428_v59  ;;  %v1439_v18 = vand.u32 2147483647, %v1428_v59 }
 0xe21   :  { %v1377_v19 = vmul.f32 %v2256_v44, %v1376_v27 }
 0xe22   :  { %v1442_v36 = vor.u32 1.1754944e-38, %v1441_v43  ;;  %vm1440_vm6 = vcmp.eq.f32.partialorder %v1439_v18, 8.507059e+37 }
 0xe23   :  { %v1378_v22 = vadd.f32 %v2256_v44, %v1377_v19 }
 0xe25   :  { %v1382_v39 = vsel %vm1381_vm1, %v2256_v44, %v1378_v22 }
 0xe26   :  { %v1387_v57 = vsel %vm1384_vm2, %v1386_v52, %v1382_v39  ;;  %v2260_v0 = vpop.eup %2259 }
 0xe27   :  { %v1431_v1 = vmul.f32 %v2260_v0, %v1428_v59  ;;  %vm1436_vm3 = vweird.f32 %v2260_v0  ;;  %v1405_v62 = vmul.f32 %v1387_v57, %v3009_v23  ;;  %v2009_v23 = vmul.f32 -1.442695, %v3045_v30 }
 0xe28   :  { %vm1437_vm5 = vmor %vm1435_vm4, %vm1436_vm3 }
 0xe29   :  { %v1432_v61 = vsub.f32 1.0, %v1431_v1 }
 0xe2b   :  { %v1433_v13 = vmul.f32 %v2260_v0, %v1432_v61 }
 0xe2d   :  { %v1434_v38 = vadd.f32 %v2260_v0, %v1433_v13 }
 0xe2f   :  { %v1438_v32 = vsel %vm1437_vm5, %v2260_v0, %v1434_v38 }
 0xe30   :  { %v1443_v46 = vsel %vm1440_vm6, %v1442_v36, %v1438_v32 }
 0xe31   :  { %v1461_v47 = vmul.f32 %v1443_v46, %v3014_v12 }
 0xe66   :  { %v1408_v56 = vpop.permute.xlu2 %1407 }
 0xe67   :  { %v1410_v28 = vmul.f32 %v1408_v56, %v1387_v57 }
 0xe69   :  { %1412 = vrot.lane.b32.xlu2 %v1410_v28, %s2474_s8 }
 0xe85   :  { %v1464_v45 = vpop.permute.xlu1 %1463 }
 0xe86   :  { %v1466_v58 = vmul.f32 %v1464_v45, %v1443_v46 }
 0xe88   :  { %1468 = vrot.lane.b32.xlu1 %v1466_v58, %s2474_s8 }
 0xec3   :  { %v1413_v15 = vpop.permute.xlu2 %1412 }
 0xec4   :  { %v3056_v16 = vadd.f32 %v1413_v15, %v1405_v62 }
 0xec6   :  { %2261 = vtanh.f32 %v3056_v16 }
 0xecc   :  { %v2262_v29 = vpop.eup %2261 }
 0xecd   :  { %1418 = vrot.lane.b32.xlu1 %v2262_v29, %s2474_s8 }
 0xefa   :  { %v1469_v48 = vpop.permute.xlu1 %1468 }
 0xefb   :  { %v3061_v26 = vadd.f32 %v1469_v48, %v1461_v47 }
 0xefd   :  { %2263 = vtanh.f32 %v3061_v26 }
 0xefe   :  { %2265 = vpow2.f32 %v2009_v23 }
 0xf03   :  { %v2264_v37 = vpop.eup %2263 }
 0xf04   :  { %1474 = vrot.lane.b32.xlu0 %v2264_v37, %s2474_s8  ;;  %v2266_v41 = vpop.eup %2265 }
 0xf05   :  { %v1429_v50 = vadd.f32 1.0, %v2266_v41 }
 0xf07   :  { %2267 = vrcp.f32 %v1429_v50  ;;  %v1456_v12 = vand.u32 2147483648, %v1429_v50  ;;  %vm1450_vm9 = vweird.f32 %v1429_v50  ;;  %v1454_v49 = vand.u32 2147483647, %v1429_v50 }
 0xf08   :  { %2269 = vpow2.f32 %v2007_v8 }
 0xf09   :  { %v1457_v7 = vor.u32 1.1754944e-38, %v1456_v12  ;;  %vm1455_vm11 = vcmp.eq.f32.partialorder %v1454_v49, 8.507059e+37 }
 0xf0c   :  { %1537 = vperm.xlu0 %2116, %v2310_v42  }
 0xf0d   :  { %v2268_v54 = vpop.eup %2267 }
 0xf0e   :  { %v1446_v63 = vmul.f32 %v2268_v54, %v1429_v50  ;;  %vm1451_vm7 = vweird.f32 %v2268_v54  ;;  %v2270_v2 = vpop.eup %2269 }
 0xf0f   :  { %vm1452_vm10 = vmor %vm1450_vm9, %vm1451_vm7  ;;  %v1373_v3 = vadd.f32 1.0, %v2270_v2 }
 0xf10   :  { %v1447_v17 = vsub.f32 1.0, %v1446_v63 }
 0xf11   :  { %2271 = vrcp.f32 %v1373_v3  ;;  %v1400_v60 = vand.u32 2147483648, %v1373_v3  ;;  %vm1394_vm13 = vweird.f32 %v1373_v3  ;;  %v1398_v19 = vand.u32 2147483647, %v1373_v3 }
 0xf12   :  { %v1448_v21 = vmul.f32 %v2268_v54, %v1447_v17 }
 0xf13   :  { %v1401_v6 = vor.u32 1.1754944e-38, %v1400_v60  ;;  %vm1399_vm15 = vcmp.eq.f32.partialorder %v1398_v19, 8.507059e+37 }
 0xf14   :  { %v1449_v35 = vadd.f32 %v2268_v54, %v1448_v21 }
 0xf16   :  { %v1453_v55 = vsel %vm1452_vm10, %v2268_v54, %v1449_v35 }
 0xf17   :  { %v1458_v9 = vsel %vm1455_vm11, %v1457_v7, %v1453_v55  ;;  %v2272_v40 = vpop.eup %2271 }
 0xf18   :  { %v1390_v44 = vmul.f32 %v2272_v40, %v1373_v3  ;;  %vm1395_vm12 = vweird.f32 %v2272_v40 }
 0xf19   :  { %vm1396_vm14 = vmor %vm1394_vm13, %vm1395_vm12 }
 0xf1a   :  { %v1391_v14 = vsub.f32 1.0, %v1390_v44 }
 0xf1c   :  { %v1392_v53 = vmul.f32 %v2272_v40, %v1391_v14 }
 0xf1e   :  { %v1393_v27 = vadd.f32 %v2272_v40, %v1392_v53 }
 0xf20   :  { %v1397_v22 = vsel %vm1396_vm14, %v2272_v40, %v1393_v27 }
 0xf21   :  { %v1402_v34 = vsel %vm1399_vm15, %v1401_v6, %v1397_v22 }
 0xf3f   :  { %v1419_v25 = vpop.permute.xlu1 %1418 }
 0xf40   :  { %v1421_v20 = vmul.f32 %v1419_v25, %v1402_v34 }
 0xf76   :  { %v1475_v33 = vpop.permute.xlu0 %1474 }
 0xf77   :  { %v1477_v30 = vmul.f32 %v1475_v33, %v1458_v9 }
 0xf79   :  { %1479 = vrot.lane.b32.xlu2 %v1477_v30, %s2474_s8 }
 0xf7e   :  { %v1538_v56 = vpop.permute.xlu0 %1537 }
 0xf7f   :  { %v1541_v57 = vmul.f32 %v1538_v56, %v2546_v4  ;;  %v1540_v46 = vmul.f32 %v1538_v56, %v2556_v10 }
 0xf81   :  { %v1543_v28 = vadd.f32 %v1541_v57, %v2548_v5  ;;  %v1542_v58 = vadd.f32 %v1540_v46, %v2558_v11 }
 0xfd3   :  { %v1480_v39 = vpop.permute.xlu2 %1479 }
 0xfd4   :  { %v1482_v52 = vsel %vm224_vm8, %v1421_v20, %v1480_v39 }
 0xfd5   :  { %v1483_v59 = vpack.c.bf16 %v1482_v52, %v1482_v52 }
 0xfd7   :  { %1492 = vmatmul.bf16.vlgmr.msra.gmra.mxu0 %v1483_v59  ;;  %1505 = vmatmul.bf16.vlgmr.msra.gmra.mxu1 %v1483_v59 }
 0xfd8   :  { %1518 = vmatmul.bf16.vlgmr.msra.gmra.mxu2 %v1483_v59  ;;  %1531 = vmatmul.bf16.vlgmr.msra.gmra.mxu3 %v1483_v59 }
0x1054   :  { %v1493_v0 = vpop.f32.mrf.mxu0  ;;  %v1506_v1 = vpop.f32.mrf.mxu1 }
0x1055   :  { %v3071_v61 = vadd.f32 %v1543_v28, %v1506_v1  ;;  %v1544_v62 = vadd.f32 %v1542_v58, %v1493_v0 }
0x1057   :  { %2273 = vtanh.f32 %v3071_v61  ;;  %v2010_v15 = vmul.f32 -1.442695, %v1544_v62 }
0x105b   :  { %v1519_v13 = vpop.f32.mrf.mxu2  ;;  %v1532_v38 = vpop.f32.mrf.mxu3 }
0x105c   :  { %v3075_v43 = vadd.f32 %v1532_v38, %v2740_v24  ;;  %v1495_v18 = vpop.f32.mrf.mxu0  ;;  %v1508_v32 = vpop.f32.mrf.mxu1  ;;  %v1546_v23 = vadd.f32 %v1519_v13, %v2748_v51 }
0x105d   :  { %v2274_v36 = vpop.eup %2273 }
0x105e   :  { %2275 = vtanh.f32 %v3075_v43  ;;  %1589 = vrot.lane.b32.xlu2 %v2274_v36, %s2474_s8  ;;  %v2012_v50 = vmul.f32 -1.442695, %v1546_v23  ;;  %v2013_v39 = vmul.f32 -1.442695, %v3075_v43  ;;  %v2011_v36 = vmul.f32 -1.442695, %v3071_v61 }
0x105f   :  { %2277 = vpow2.f32 %v2010_v15 }
0x1063   :  { %v1521_v4 = vpop.f32.mrf.mxu2  ;;  %v1534_v5 = vpop.f32.mrf.mxu3 }
0x1064   :  { %v2276_v45 = vpop.eup %2275 }
0x1065   :  { %1645 = vrot.lane.b32.xlu1 %v2276_v45, %s2474_s8  ;;  %v2278_v29 = vpop.eup %2277 }
0x1066   :  { %v1554_v47 = vadd.f32 1.0, %v2278_v29 }
0x1068   :  { %2279 = vrcp.f32 %v1554_v47  ;;  %v1567_v17 = vand.u32 2147483648, %v1554_v47  ;;  %vm1561_vm1 = vweird.f32 %v1554_v47  ;;  %v1565_v10 = vand.u32 2147483647, %v1554_v47 }
0x1069   :  { %2281 = vpow2.f32 %v2012_v50 }
0x106a   :  { %v1568_v35 = vor.u32 1.1754944e-38, %v1567_v17  ;;  %vm1566_vm3 = vcmp.eq.f32.partialorder %v1565_v10, 8.507059e+37 }
0x106e   :  { %v2280_v48 = vpop.eup %2279 }
0x106f   :  { %v1557_v37 = vmul.f32 %v2280_v48, %v1554_v47  ;;  %vm1562_vm0 = vweird.f32 %v2280_v48  ;;  %v2282_v11 = vpop.eup %2281 }
0x1070   :  { %vm1563_vm2 = vmor %vm1561_vm1, %vm1562_vm0  ;;  %v1610_v12 = vadd.f32 1.0, %v2282_v11 }
0x1071   :  { %v1558_v41 = vsub.f32 1.0, %v1557_v37 }
0x1072   :  { %2283 = vrcp.f32 %v1610_v12  ;;  %v1623_v3 = vand.u32 2147483648, %v1610_v12  ;;  %vm1617_vm5 = vweird.f32 %v1610_v12  ;;  %v1621_v31 = vand.u32 2147483647, %v1610_v12 }
0x1073   :  { %v1559_v54 = vmul.f32 %v2280_v48, %v1558_v41 }
0x1074   :  { %v1624_v40 = vor.u32 1.1754944e-38, %v1623_v3  ;;  %vm1622_vm7 = vcmp.eq.f32.partialorder %v1621_v31, 8.507059e+37 }
0x1075   :  { %v1560_v63 = vadd.f32 %v2280_v48, %v1559_v54 }
0x1077   :  { %v1564_v21 = vsel %vm1563_vm2, %v2280_v48, %v1560_v63 }
0x1078   :  { %v1569_v55 = vsel %vm1566_vm3, %v1568_v35, %v1564_v21  ;;  %v2284_v9 = vpop.eup %2283 }
0x1079   :  { %v1613_v33 = vmul.f32 %v2284_v9, %v1610_v12  ;;  %vm1618_vm4 = vweird.f32 %v2284_v9  ;;  %v1587_v27 = vmul.f32 %v1569_v55, %v3056_v16 }
0x107a   :  { %vm1619_vm6 = vmor %vm1617_vm5, %vm1618_vm4 }
0x107b   :  { %v1614_v30 = vsub.f32 1.0, %v1613_v33 }
0x107d   :  { %v1615_v8 = vmul.f32 %v2284_v9, %v1614_v30 }
0x107f   :  { %v1616_v2 = vadd.f32 %v2284_v9, %v1615_v8 }
0x1081   :  { %v1620_v42 = vsel %vm1619_vm6, %v2284_v9, %v1616_v2 }
0x1082   :  { %v1625_v14 = vsel %vm1622_vm7, %v1624_v40, %v1620_v42 }
0x1083   :  { %v1643_v6 = vmul.f32 %v1625_v14, %v3061_v26 }
0x10b8   :  { %v1590_v49 = vpop.permute.xlu2 %1589 }
0x10b9   :  { %v1592_v7 = vmul.f32 %v1590_v49, %v1569_v55 }
0x10bb   :  { %1594 = vrot.lane.b32.xlu2 %v1592_v7, %s2474_s8 }
0x10d7   :  { %v1646_v44 = vpop.permute.xlu1 %1645 }
0x10d8   :  { %v1648_v53 = vmul.f32 %v1646_v44, %v1625_v14 }
0x10da   :  { %1650 = vrot.lane.b32.xlu1 %v1648_v53, %s2474_s8  ;;  %v2042_v53 = vld [vmem:[#allocation9 + $0x30] sm:$0xf] }
0x1115   :  { %v1595_v60 = vpop.permute.xlu2 %1594 }
0x1116   :  { %v1597_v19 = vadd.f32 %v1595_v60, %v1587_v27  ;;  %v2089_v27 = vld [vmem:[#allocation9 + $0x34] sm:$0xf0]  ;;  %v2088_v60 = vld [vmem:[#allocation9 + $0x34] sm:$0xf] }
0x1118   :  { %2285 = vtanh.f32 %v1597_v19  ;;  %v2043_v19 = vor.u32 %v2089_v27, %v2042_v53 }
0x111a   :  { %1812 = vmatpush.bf16.msrb.mxu2 %v2043_v19 }
0x111e   :  { %v2286_v22 = vpop.eup %2285 }
0x111f   :  { %1600 = vrot.lane.b32.xlu1 %v2286_v22, %s2474_s8  ;;  %v2044_v22 = vld [vmem:[#allocation9 + $0x38] sm:$0xf0] }
0x114c   :  { %v1651_v25 = vpop.permute.xlu1 %1650 }
0x114d   :  { %v3088_v34 = vadd.f32 %v1651_v25, %v1643_v6  ;;  %v2034_v6 = vld [vmem:[#allocation9 + $0x20] sm:$0xf]  ;;  %v2087_v25 = vld [vmem:[#allocation9 + $0x24] sm:$0xf0] }
0x114f   :  { %2287 = vtanh.f32 %v3088_v34 }
0x1150   :  { %2289 = vpow2.f32 %v2013_v39  ;;  %v2086_v39 = vld [vmem:[#allocation9 + $0x24] sm:$0xf] }
0x1155   :  { %v2288_v20 = vpop.eup %2287 }
0x1156   :  { %1656 = vrot.lane.b32.xlu0 %v2288_v20, %s2474_s8  ;;  %v2290_v16 = vpop.eup %2289  ;;  %v2047_v20 = vor.u32 %v2088_v60, %v2044_v22 }
0x1157   :  { %v1611_v52 = vadd.f32 1.0, %v2290_v16  ;;  %v2036_v16 = vld [vmem:[#allocation9 + $0x28] sm:$0xf0] }
0x1158   :  { %1825 = vmatpush.bf16.msrb.mxu3 %v2047_v20 }
0x1159   :  { %2291 = vrcp.f32 %v1611_v52  ;;  %v1638_v26 = vand.u32 2147483648, %v1611_v52  ;;  %vm1632_vm10 = vweird.f32 %v1611_v52  ;;  %v1636_v1 = vand.u32 2147483647, %v1611_v52 }
0x115a   :  { %2293 = vpow2.f32 %v2011_v36 }
0x115b   :  { %v1639_v38 = vor.u32 1.1754944e-38, %v1638_v26  ;;  %vm1637_vm12 = vcmp.eq.f32.partialorder %v1636_v1, 8.507059e+37 }
0x115f   :  { %v2292_v59 = vpop.eup %2291 }
0x1160   :  { %v1628_v56 = vmul.f32 %v2292_v59, %v1611_v52  ;;  %vm1633_vm9 = vweird.f32 %v2292_v59  ;;  %v2294_v4 = vpop.eup %2293  ;;  %v2035_v52 = vor.u32 %v2087_v25, %v2034_v6 }
0x1161   :  { %vm1634_vm11 = vmor %vm1632_vm10, %vm1633_vm9  ;;  %v1555_v5 = vadd.f32 1.0, %v2294_v4 }
0x1162   :  { %v1629_v57 = vsub.f32 1.0, %v1628_v56  ;;  %v2026_v56 = vld [vmem:[#allocation9 + $0x10] sm:$0xf]  ;;  %1813 = vmatpush.bf16.msrb.mxu2 %v2035_v52 }
0x1163   :  { %2295 = vrcp.f32 %v1555_v5  ;;  %v1582_v29 = vand.u32 2147483648, %v1555_v5  ;;  %vm1576_vm14 = vweird.f32 %v1555_v5  ;;  %v1580_v47 = vand.u32 2147483647, %v1555_v5 }
0x1164   :  { %v1630_v28 = vmul.f32 %v2292_v59, %v1629_v57  ;;  %v2085_v57 = vld [vmem:[#allocation9 + $0x14] sm:$0xf0] }
0x1165   :  { %v1583_v37 = vor.u32 1.1754944e-38, %v1582_v29  ;;  %vm1581_vm0 = vcmp.eq.f32.partialorder %v1580_v47, 8.507059e+37  ;;  %v2027_v26 = vor.u32 %v2085_v57, %v2026_v56 }
0x1166   :  { %v1631_v0 = vadd.f32 %v2292_v59, %v1630_v28  ;;  %v2084_v28 = vld [vmem:[#allocation9 + $0x14] sm:$0xf] }
0x1167   :  { %1814 = vmatpush.bf16.msrb.mxu2 %v2027_v26 }
0x1168   :  { %v1635_v13 = vsel %vm1634_vm11, %v2292_v59, %v1631_v0  ;;  %v2039_v59 = vor.u32 %v2086_v39, %v2036_v16  ;;  %v2028_v0 = vld [vmem:[#allocation9 + $0x18] sm:$0xf0] }
0x1169   :  { %v1640_v18 = vsel %vm1637_vm12, %v1639_v38, %v1635_v13  ;;  %v2296_v45 = vpop.eup %2295  ;;  %v2031_v1 = vor.u32 %v2084_v28, %v2028_v0 }
0x116a   :  { %v1572_v46 = vmul.f32 %v2296_v45, %v1555_v5  ;;  %vm1577_vm13 = vweird.f32 %v2296_v45  ;;  %1826 = vmatpush.bf16.msrb.mxu3 %v2039_v59  ;;  %v2018_v5 = vld [vmem:[#allocation9] sm:$0xf] }
0x116b   :  { %vm1578_vm15 = vmor %vm1576_vm14, %vm1577_vm13 }
0x116c   :  { %v1573_v58 = vsub.f32 1.0, %v1572_v46  ;;  %v2082_v46 = vld [vmem:[#allocation9 + $0x4] sm:$0xf] }
0x116e   :  { %v1574_v62 = vmul.f32 %v2296_v45, %v1573_v58  ;;  %1827 = vmatpush.bf16.msrb.mxu3 %v2031_v1 }
0x1170   :  { %v1575_v15 = vadd.f32 %v2296_v45, %v1574_v62  ;;  %v2020_v62 = vld [vmem:[#allocation9 + $0x8] sm:$0xf0] }
0x1172   :  { %v1579_v48 = vsel %vm1578_vm15, %v2296_v45, %v1575_v15  ;;  %v2083_v45 = vld [vmem:[#allocation9 + $0x4] sm:$0xf0]  ;;  %v2023_v15 = vor.u32 %v2082_v46, %v2020_v62 }
0x1173   :  { %v1584_v41 = vsel %vm1581_vm0, %v1583_v37, %v1579_v48  ;;  %v2019_v58 = vor.u32 %v2083_v45, %v2018_v5 }
0x1174   :  { %1828 = vmatpush.bf16.msrb.mxu3 %v2023_v15 }
0x1175   :  { %1815 = vmatpush.bf16.msrb.mxu2 %v2019_v58 }
0x1191   :  { %v1601_v23 = vpop.permute.xlu1 %1600 }
0x1192   :  { %v1603_v61 = vmul.f32 %v1601_v23, %v1584_v41 }
0x11c8   :  { %v1657_v32 = vpop.permute.xlu0 %1656 }
0x11c9   :  { %v1659_v43 = vmul.f32 %v1657_v32, %v1640_v18 }
0x11cb   :  { %1661 = vrot.lane.b32.xlu2 %v1659_v43, %s2474_s8 }
0x1225   :  { %v1662_v50 = vpop.permute.xlu2 %1661 }
0x1226   :  { %v1664_v54 = vsel %vm224_vm8, %v1603_v61, %v1662_v50 }
0x1227   :  { %v1665_v63 = vpack.c.bf16 %v1664_v54, %v1664_v54 }
0x1229   :  { %1674 = vmatmul.bf16.vlgmr.msrb.gmra.mxu0 %v1665_v63  ;;  %1687 = vmatmul.bf16.vlgmr.msrb.gmra.mxu1 %v1665_v63 }
0x12a6   :  { %v1675_v17 = vpop.f32.mrf.mxu0  ;;  %v1688_v10 = vpop.f32.mrf.mxu1 }
0x12a7   :  { %v1693_v11 = vadd.f32 %v1688_v10, %v2740_v24  ;;  %v1692_v49 = vadd.f32 %v1675_v17, %v2748_v51 }
0x12a9   :  { %2297 = vtanh.f32 %v1693_v11  ;;  %v2014_v55 = vmul.f32 -1.442695, %v1692_v49  ;;  %v2015_v43 = vmul.f32 -1.442695, %v1693_v11  ;;  %v1759_v11 = vld [vmem:[#allocation10] sm:$0x3] }
0x12ab   :  { %2299 = vpow2.f32 %v2014_v55 }
0x12ae   :  { %v1677_v21 = vpop.f32.mrf.mxu0  ;;  %v1690_v35 = vpop.f32.mrf.mxu1 }
0x12af   :  { %v2298_v12 = vpop.eup %2297  ;;  %v1761_v21 = vperm.slane %v1759_v11, 0  ;;  %v1762_v35 = vperm.slane %v1759_v11, 1 }
0x12b0   :  { %1735 = vrot.lane.b32.xlu0 %v2298_v12, %s2474_s8 }
0x12b1   :  { %v2300_v7 = vpop.eup %2299 }
0x12b2   :  { %v1700_v9 = vadd.f32 1.0, %v2300_v7 }
0x12b4   :  { %2301 = vrcp.f32 %v1700_v9  ;;  %v1713_v24 = vand.u32 2147483648, %v1700_v9  ;;  %vm1707_vm2 = vweird.f32 %v1700_v9  ;;  %v1711_v31 = vand.u32 2147483647, %v1700_v9 }
0x12b6   :  { %v1714_v40 = vor.u32 1.1754944e-38, %v1713_v24  ;;  %vm1712_vm4 = vcmp.eq.f32.partialorder %v1711_v31, 8.507059e+37 }
0x12ba   :  { %v2302_v33 = vpop.eup %2301 }
0x12bb   :  { %v1703_v30 = vmul.f32 %v2302_v33, %v1700_v9  ;;  %vm1708_vm1 = vweird.f32 %v2302_v33 }
0x12bc   :  { %vm1709_vm3 = vmor %vm1707_vm2, %vm1708_vm1 }
0x12bd   :  { %v1704_v8 = vsub.f32 1.0, %v1703_v30 }
0x12bf   :  { %v1705_v2 = vmul.f32 %v2302_v33, %v1704_v8 }
0x12c1   :  { %v1706_v3 = vadd.f32 %v2302_v33, %v1705_v2 }
0x12c3   :  { %v1710_v42 = vsel %vm1709_vm3, %v2302_v33, %v1706_v3 }
0x12c4   :  { %v1715_v51 = vsel %vm1712_vm4, %v1714_v40, %v1710_v42 }
0x12c5   :  { %v1733_v13 = vmul.f32 %v1715_v51, %v3088_v34 }
0x1322   :  { %v1736_v44 = vpop.permute.xlu0 %1735 }
0x1323   :  { %v1738_v14 = vmul.f32 %v1736_v44, %v1715_v51 }
0x1325   :  { %1740 = vrot.lane.b32.xlu1 %v1738_v14, %s2474_s8 }
0x1397   :  { %v1741_v38 = vpop.permute.xlu1 %1740 }
0x1398   :  { %v1743_v18 = vadd.f32 %v1741_v38, %v1733_v13 }
0x139a   :  { %2303 = vtanh.f32 %v1743_v18 }
0x139b   :  { %2305 = vpow2.f32 %v2015_v43 }
0x13a0   :  { %v2304_v32 = vpop.eup %2303 }
0x13a1   :  { %1746 = vrot.lane.b32.xlu2 %v2304_v32, %s2474_s8  ;;  %v2306_v36 = vpop.eup %2305 }
0x13a2   :  { %v1701_v4 = vadd.f32 1.0, %v2306_v36 }
0x13a4   :  { %2307 = vrcp.f32 %v1701_v4  ;;  %v1728_v23 = vand.u32 2147483648, %v1701_v4  ;;  %vm1722_vm6 = vweird.f32 %v1701_v4  ;;  %v1726_v41 = vand.u32 2147483647, %v1701_v4 }
0x13a6   :  { %v1729_v50 = vor.u32 1.1754944e-38, %v1728_v23  ;;  %vm1727_vm9 = vcmp.eq.f32.partialorder %v1726_v41, 8.507059e+37 }
0x13aa   :  { %v2308_v34 = vpop.eup %2307 }
0x13ab   :  { %v1718_v29 = vmul.f32 %v2308_v34, %v1701_v4  ;;  %vm1723_vm5 = vweird.f32 %v2308_v34 }
0x13ac   :  { %vm1724_vm7 = vmor %vm1722_vm6, %vm1723_vm5 }
0x13ad   :  { %v1719_v47 = vsub.f32 1.0, %v1718_v29 }
0x13af   :  { %v1720_v48 = vmul.f32 %v2308_v34, %v1719_v47 }
0x13b1   :  { %v1721_v37 = vadd.f32 %v2308_v34, %v1720_v48 }
0x13b3   :  { %v1725_v61 = vsel %vm1724_vm7, %v2308_v34, %v1721_v37 }
0x13b4   :  { %v1730_v54 = vsel %vm1727_vm9, %v1729_v50, %v1725_v61 }
0x13fb   :  { %v1747_v63 = vpop.permute.xlu2 %1746 }
0x13fc   :  { %v1749_v17 = vmul.f32 %v1747_v63, %v1730_v54 }
0x13fe   :  { %v1750_v10 = vpack.c.bf16 %v1749_v17, %v1749_v17 }
0x1400   :  { %2048 = vmatmul.msk.bf16.vlgmr.msrb.gmra.mxu2 %vm224_vm8, %v1750_v10  ;;  %2049 = vmatmul.msk.bf16.vlgmr.msrb.gmra.mxu3 %vm224_vm8, %v1750_v10 }
0x1483   :  { %v1817_v12 = vpop.f32.mrf.mxu2  ;;  %v1830_v49 = vpop.f32.mrf.mxu3 }
0x1484   :  { %v1818_v55 = vadd.f32 %v1817_v12, %v1761_v21  ;;  %v1831_v7 = vadd.f32 %v1830_v49, %v1762_v35 }
0x1486   :  { %1834 = vst [vmem:[%s3117_s7] sm:$0xff] %v1818_v55 }
0x1487   :  { %1835 = vst [vmem:[%s3117_s7 + $0x8] sm:$0xff] %v1831_v7 }
0x148b   :  { %v1819_v9 = vpop.f32.mrf.mxu2  ;;  %v1832_v33 = vpop.f32.mrf.mxu3 }
0x148c   :  { %1840 = vsyncpa [#allocation3], 1 }
0x148d   :  { %1841 = vsyncpa [#allocation5], 1 }
0x148e   :  { %1842 = vsyncpa [#allocation8], 1 }
0x148f   :  { %1843 = vsyncpa [#allocation11], 1 }

</bundles_post_ra>
